<compile_context>
chip_gen: v7x
topology: tpu7x:2x2x1
jax: 0.10.0
libtpu: 0.0.40
codegen_flags: <defaults>
</compile_context>

<pallas_src>
import jax
import jax.numpy as jnp
from jax.experimental import pallas as pl
from jax.experimental.pallas import tpu as pltpu

D_MODEL = 384
N_HEADS = 6                    # q/k project to 6 features -> head_dim(q,k) = 1
D_V = D_MODEL // 4             # 96
D_HEAD_V = D_V // N_HEADS      # 16
QKV_W = D_V + 2 * N_HEADS      # 108 fused projection width
QKV_PAD = 128                  # padded to one full lane register
# fused qkv column layout: [ v : 0..95 | q : 96..101 | k : 102..107 | zeros ]
Q_OFF = D_V
K_OFF = D_V + N_HEADS


def _make_kernel(bt, seq, compute_dtype, exp_dtype):
    cd = compute_dtype

    def kernel(x_ref, wqkv_ref, bqkv_ref, wd_ref, bd_ref, o_ref, qkv_sc, av_sc):
        # ---- fused q/k/v projection: one lane-dense (Bt*S, 384) @ (384, 128) matmul
        x2 = x_ref[...].reshape(bt * seq, D_MODEL)            # free relayout when S % 8 == 0
        qkv2 = jnp.dot(x2.astype(cd), wqkv_ref[...],
                       preferred_element_type=jnp.float32) + bqkv_ref[...]
        qkv_sc[...] = qkv2.reshape(bt, seq, QKV_PAD)           # stage in VMEM scratch

        # tiny per-head q / k material (read back from scratch: qkv2 value dies here)
        q_all = qkv_sc[:, :, Q_OFF:Q_OFF + N_HEADS]            # (Bt, S, 6)
        kt_all = jnp.swapaxes(qkv_sc[:, :, K_OFF:K_OFF + N_HEADS], 1, 2)   # (Bt, 6, S)
        kmax = jnp.max(kt_all, axis=-1, keepdims=True)         # (Bt, 6, 1)
        kmin = jnp.min(kt_all, axis=-1, keepdims=True)         # (Bt, 6, 1)

        for h in range(N_HEADS):                               # static unroll; nothing loop-carried
            qh = q_all[:, :, h:h + 1]                          # (Bt, S, 1)
            krow = kt_all[:, h:h + 1, :]                       # (Bt, 1, S)
            # exact row-max of the rank-1 scores s_ij = q_i * k_j (no (S,S) XLU reduce)
            rowmax = jnp.where(qh >= 0.0,
                               qh * kmax[:, h:h + 1, :],
                               qh * kmin[:, h:h + 1, :])       # (Bt, S, 1)
            s = qh * krow - rowmax                             # (Bt, S, S); scale = 1/sqrt(1)
            p = jnp.exp(s.astype(exp_dtype))                   # values <= 1 after max shift
            denom = jnp.sum(p, axis=-1, keepdims=True, dtype=jnp.float32)  # (Bt, S, 1)
            inv = pl.reciprocal(denom, approx=True)
            inv = inv * (2.0 - denom * inv)                    # one Newton step (~f32 exact)
            vh = qkv_sc[:, :, h * D_HEAD_V:(h + 1) * D_HEAD_V]                    # (Bt, S, 16)
            pv = jnp.einsum('bij,bjd->bid', p.astype(cd), vh.astype(cd),
                            preferred_element_type=jnp.float32)                   # (Bt, S, 16)
            # normalize the (S,16) output (cheaper than scaling the (S,S) probs);
            # 16-lane static-slice store lands in VMEM scratch, not HBM.
            av_sc[:, :, h * D_HEAD_V:(h + 1) * D_HEAD_V] = pv * inv

        # ---- one dense projection for all heads: (Bt*S, 96) @ (96, 384) + bd
        av2 = av_sc[...].reshape(bt * seq, D_V)
        out2 = jnp.dot(av2.astype(cd), wd_ref[...],
                       preferred_element_type=jnp.float32) + bd_ref[...]
        o_ref[...] = out2.reshape(bt, seq, D_MODEL).astype(o_ref.dtype)

    return kernel


def _device_kind():
    try:
        return jax.devices()[0].device_kind.lower()
    except Exception:
        return ""


def _vmem_limit_bytes():
    cap = None
    try:
        cap = int(getattr(pltpu.get_tpu_info(), "vmem_capacity_bytes", 0)) or None
    except Exception:
        cap = None
    if cap is None:
        cap = 64 * 1024 * 1024          # conservative: v7x per-TensorCore VMEM
    # leave headroom for compiler internals; cap the scoped limit at 96 MiB
    return max(32 * 1024 * 1024, min(cap - (8 << 20), 96 * 1024 * 1024))


def _num_tensorcores_per_chip():
    kind = _device_kind()
    if any(t in kind for t in ("v7", "7x", "v5p", "v4")):
        return 2
    return 1


def _bf16_eup_ok():
    kind = _device_kind()
    return any(t in kind for t in ("v6", "v7", "7x"))


def _pick_batch_tile(B, S, vmem_limit, two_cores):
    """Batch rows per grid step: largest that fits the real VMEM footprint
    (double-buffered x/out blocks, scratch, one head's (S,S) intermediates),
    exact divisor of B; keep >=2 grid steps only on 2-TensorCore chips."""
    per_row = 4 * (
        2 * 2 * S * D_MODEL      # x in + out blocks, double-buffered
        + S * QKV_PAD            # fused qkv scratch
        + S * QKV_PAD            # attn@V scratch (96 lanes pad to 128)
        + 2 * S * S              # one head's live (S,S) scores + exp
        + S * D_MODEL            # dense-output value before the o_ref store
        + 4 * S * 64             # misc small per-head intermediates
    )
    fixed = 2 * 4 * (D_MODEL * QKV_PAD + D_V * D_MODEL + QKV_PAD + D_MODEL) + (1 << 20)
    budget = max(int(vmem_limit * 0.6) - fixed, per_row)
    bt = max(1, min(B, budget // per_row))
    if two_cores and B >= 2:
        bt = min(bt, max(1, B // 2))   # keep >=2 grid steps so both TCs get work
    while B % bt:
        bt -= 1
    return bt


def attention1_forward(x, params, y=None, z=None, attn_mask=None,
                       key_padding_mask=None, need_weights=False, is_causal=False,
                       compute_dtype=jnp.float32):
    """Mirrors Attention1.forward; y/z/masks/flags are unused (as in PyTorch).
    compute_dtype=jnp.bfloat16 runs the MXU matmuls with bf16 operands (f32 accum)."""
    B, S, D = x.shape
    assert D == D_MODEL
    wq, bq, wk, bk, wv, bv, wd, bd = params

    f32 = jnp.float32
    cd = compute_dtype
    # Fuse q/k/v weights into one lane-dense (384, 128) block: [v | q | k | 0-pad].
    wqkv = jnp.zeros((D_MODEL, QKV_PAD), f32)
    wqkv = wqkv.at[:, :D_V].set(wv.astype(f32))
    wqkv = wqkv.at[:, Q_OFF:Q_OFF + N_HEADS].set(wq.astype(f32))
    wqkv = wqkv.at[:, K_OFF:K_OFF + N_HEADS].set(wk.astype(f32))
    bqkv = jnp.zeros((1, QKV_PAD), f32)
    bqkv = bqkv.at[:, :D_V].set(bv.reshape(1, D_V).astype(f32))
    bqkv = bqkv.at[:, Q_OFF:Q_OFF + N_HEADS].set(bq.reshape(1, N_HEADS).astype(f32))
    bqkv = bqkv.at[:, K_OFF:K_OFF + N_HEADS].set(bk.reshape(1, N_HEADS).astype(f32))
    # pre-cast weights host-side (hoists per-step casts out of the kernel; halves
    # the weight DMA bytes on the bf16 path). Biases stay f32 (added to f32 acc).
    wqkv = wqkv.astype(cd)
    wd2 = wd.astype(cd)
    bd2 = bd.reshape(1, D_MODEL).astype(f32)

    vmem_limit = _vmem_limit_bytes()
    two_cores = _num_tensorcores_per_chip() >= 2
    Bt = _pick_batch_tile(B, S, vmem_limit, two_cores)
    # bf16 exp only where the EUP has a bf16 path (v6e / v7x); always f32 for the f32 path.
    exp_dtype = cd if (jnp.dtype(cd) == jnp.dtype(jnp.bfloat16) and _bf16_eup_ok()) else f32
    kernel = _make_kernel(Bt, S, cd, exp_dtype)

    # TODO(synk): for B == 1 on a 2-TensorCore chip (v7x), add a second "parallel"
    # grid axis over query-row blocks so both cores get work.

    def whole(a):   # untiled, grid-invariant parameter block (fetched once, stays resident)
        return pl.BlockSpec(a.shape, lambda b: (0,) * a.ndim)

    out = pl.pallas_call(
        kernel,
        out_shape=jax.ShapeDtypeStruct((B, S, D_MODEL), x.dtype),
        grid_spec=pltpu.PrefetchScalarGridSpec(
            num_scalar_prefetch=0,
            grid=(B // Bt,),
            in_specs=[
                pl.BlockSpec((Bt, S, D_MODEL), lambda b: (b, 0, 0)),
                whole(wqkv), whole(bqkv), whole(wd2), whole(bd2),
            ],
            out_specs=pl.BlockSpec((Bt, S, D_MODEL), lambda b: (b, 0, 0)),
            scratch_shapes=[
                pltpu.VMEM((Bt, S, QKV_PAD), jnp.float32),   # staged fused qkv projection
                pltpu.VMEM((Bt, S, D_V), jnp.float32),       # per-head attn@V outputs (96 lanes)
            ],
        ),
        compiler_params=pltpu.CompilerParams(
            dimension_semantics=("parallel",),
            vmem_limit_bytes=vmem_limit,
        ),
    )(x, wqkv, bqkv, wd2, bd2)
    return (out,)


def attention1_reference(x, params):
    """Pure-JAX reference replicating the PyTorch forward exactly."""
    wq, bq, wk, bk, wv, bv, wd, bd = params
    B, S, _ = x.shape
    q = x @ wq + bq[0]                                             # (B, S, 6)
    k = x @ wk + bk[0]                                             # (B, S, 6)
    v = x @ wv + bv[0]                                             # (B, S, 96)
    q_ = q.reshape(B, S, N_HEADS, 1).transpose(0, 2, 1, 3)         # (B, 6, S, 1)
    k_ = k.reshape(B, S, N_HEADS, 1).transpose(0, 2, 1, 3)         # (B, 6, S, 1)
    v_ = v.reshape(B, S, N_HEADS, D_HEAD_V).transpose(0, 2, 1, 3)  # (B, 6, S, 16)
    scores = jnp.einsum('bhie,bhje->bhij', q_, k_)                 # scale = 1/sqrt(1)
    attn = jax.nn.softmax(scores, axis=-1)
    o = jnp.einsum('bhij,bhjd->bhid', attn, v_)                    # (B, 6, S, 16)
    o = o.transpose(0, 2, 1, 3).reshape(B, S, D_V)                 # (B, S, 96)
    return o @ wd + bd[0]                                          # (B, S, 384)


if __name__ == "__main__":
    key = jax.random.PRNGKey(0)
    ks = jax.random.split(key, 9)
    B, S = 4, 8   # small demo; on a 2-TC chip Bt=2 -> grid=(2,), else Bt=4 -> grid=(1,)

    def linear_init(kw, kb, fan_in, fan_out):
        # deterministic U(-1/sqrt(fan_in), 1/sqrt(fan_in)), like nn.Linear defaults
        bound = 1.0 / (fan_in ** 0.5)
        w = jax.random.uniform(kw, (fan_in, fan_out), jnp.float32, -bound, bound)
        b = jax.random.uniform(kb, (1, fan_out), jnp.float32, -bound, bound)
        return w, b

    wq, bq = linear_init(ks[0], ks[1], D_MODEL, N_HEADS)   # query: 384 -> 6
    wk, bk = linear_init(ks[2], ks[3], D_MODEL, N_HEADS)   # key:   384 -> 6
    wv, bv = linear_init(ks[4], ks[5], D_MODEL, D_V)       # value: 384 -> 96
    wd, bd = linear_init(ks[6], ks[7], D_V, D_MODEL)       # dense:  96 -> 384
    params = (wq, bq, wk, bk, wv, bv, wd, bd)

    x = jax.random.normal(ks[8], (B, S, D_MODEL), jnp.float32)

    ref = attention1_reference(x, params)

    # f32 MXU-operand path (matches the PyTorch module closely)
    (out,) = attention1_forward(x, params)
    out = jax.block_until_ready(out)
    assert out.shape == (B, S, D_MODEL)
    assert jnp.allclose(out, ref, atol=1e-3, rtol=1e-3), float(jnp.max(jnp.abs(out - ref)))

    # bf16 MXU operands with f32 accumulation (perf path) — looser tolerance
    (out_bf16,) = attention1_forward(x, params, compute_dtype=jnp.bfloat16)
    out_bf16 = jax.block_until_ready(out_bf16)
    assert jnp.allclose(out_bf16, ref, atol=5e-2, rtol=5e-2), \
        float(jnp.max(jnp.abs(out_bf16 - ref)))

    print("KERNEL_OK")
</pallas_src>

<mosaic_0001>
module attributes {stable_mosaic.version = 11 : i64} {
  func.func @kernel(%arg0: i32, %arg1: memref<4x8x384xf32, #tpu.memory_space<vmem>>, %arg2: memref<384x128xf32, #tpu.memory_space<vmem>>, %arg3: memref<1x128xf32, #tpu.memory_space<vmem>>, %arg4: memref<96x384xf32, #tpu.memory_space<vmem>>, %arg5: memref<1x384xf32, #tpu.memory_space<vmem>>, %arg6: memref<4x8x384xf32, #tpu.memory_space<vmem>>, %arg7: memref<4x8x128xf32, #tpu.memory_space<vmem>>, %arg8: memref<4x8x96xf32, #tpu.memory_space<vmem>>) attributes {dimension_semantics = [#tpu.dimension_semantics<parallel>], iteration_bounds = array<i64: 1>, scalar_prefetch = 0 : i64, scratch_operands = 2 : i64, tpu.core_type = #tpu.core_type<tc>, window_params = [{transform_indices = @transform_0, window_bounds = array<i64: 4, 8, 384>}, {pipeline_mode = #tpu.pipeline_mode<synchronous>, transform_indices = @transform_1, window_bounds = array<i64: 384, 128>}, {pipeline_mode = #tpu.pipeline_mode<synchronous>, transform_indices = @transform_2, window_bounds = array<i64: 1, 128>}, {pipeline_mode = #tpu.pipeline_mode<synchronous>, transform_indices = @transform_3, window_bounds = array<i64: 96, 384>}, {pipeline_mode = #tpu.pipeline_mode<synchronous>, transform_indices = @transform_4, window_bounds = array<i64: 1, 384>}, {transform_indices = @transform_5, window_bounds = array<i64: 4, 8, 384>}]} {
    %c0 = arith.constant 0 : index
    %c0_0 = arith.constant 0 : index
    %c0_1 = arith.constant 0 : index
    %0 = vector.load %arg1[%c0, %c0_0, %c0_1] : memref<4x8x384xf32, #tpu.memory_space<vmem>>, vector<4x8x384xf32>
    %1 = vector.shape_cast %0 : vector<4x8x384xf32> to vector<32x384xf32>
    %c0_2 = arith.constant 0 : index
    %c0_3 = arith.constant 0 : index
    %2 = vector.load %arg2[%c0_2, %c0_3] : memref<384x128xf32, #tpu.memory_space<vmem>>, vector<384x128xf32>
    %cst = arith.constant dense<0.000000e+00> : vector<32x128xf32>
    %3 = tpu.matmul %1, %2, %cst {dimension_numbers = #tpu.dot_dimension_numbers<[1], [0], [0], [1], [0, 0, 1, 1], [], []>} : vector<32x384xf32>, vector<384x128xf32>, vector<32x128xf32> -> vector<32x128xf32>
    %c0_4 = arith.constant 0 : index
    %c0_5 = arith.constant 0 : index
    %4 = vector.load %arg3[%c0_4, %c0_5] : memref<1x128xf32, #tpu.memory_space<vmem>>, vector<1x128xf32>
    %5 = vector.broadcast %4 : vector<1x128xf32> to vector<32x128xf32>
    %6 = arith.addf %3, %5 : vector<32x128xf32>
    %7 = vector.shape_cast %6 : vector<32x128xf32> to vector<4x8x128xf32>
    %c0_6 = arith.constant 0 : index
    %c0_7 = arith.constant 0 : index
    %c0_8 = arith.constant 0 : index
    %8 = vector.load %arg7[%c0_6, %c0_7, %c0_8] : memref<4x8x128xf32, #tpu.memory_space<vmem>>, vector<4x8x128xf32>
    tpu.vector_store %arg7[%c0_6, %c0_7, %c0_8], %7 {strides = array<i32>} : memref<4x8x128xf32, #tpu.memory_space<vmem>>, vector<4x8x128xf32>,
    %c0_9 = arith.constant 0 : index
    %c0_10 = arith.constant 0 : index
    %c96 = arith.constant 96 : index
    %9 = vector.load %arg7[%c0_9, %c0_10, %c96] : memref<4x8x128xf32, #tpu.memory_space<vmem>>, vector<4x8x6xf32>
    %c0_11 = arith.constant 0 : index
    %c0_12 = arith.constant 0 : index
    %c102 = arith.constant 102 : index
    %10 = vector.load %arg7[%c0_11, %c0_12, %c102] : memref<4x8x128xf32, #tpu.memory_space<vmem>>, vector<4x8x6xf32>
    %11 = tpu.transpose %10, [0, 2, 1] : vector<4x8x6xf32> -> vector<4x6x8xf32>
    %cst_13 = arith.constant dense<0xFF800000> : vector<4x6xf32>
    %12 = vector.multi_reduction <maximumf>, %11, %cst_13 [2] : vector<4x6x8xf32> to vector<4x6xf32>
    %13 = vector.shape_cast %12 : vector<4x6xf32> to vector<4x6x1xf32>
    %cst_14 = arith.constant dense<0x7F800000> : vector<4x6xf32>
    %14 = vector.multi_reduction <minimumf>, %11, %cst_14 [2] : vector<4x6x8xf32> to vector<4x6xf32>
    %15 = vector.shape_cast %14 : vector<4x6xf32> to vector<4x6x1xf32>
    %16 = vector.extract_strided_slice %9 {offsets = [0, 0, 0], sizes = [4, 8, 1], strides = [1, 1, 1]} : vector<4x8x6xf32> to vector<4x8x1xf32>
    %17 = vector.extract_strided_slice %11 {offsets = [0, 0, 0], sizes = [4, 1, 8], strides = [1, 1, 1]} : vector<4x6x8xf32> to vector<4x1x8xf32>
    %cst_15 = arith.constant 0.000000e+00 : f32
    %18 = vector.broadcast %cst_15 : f32 to vector<4x8x1xf32>
    %19 = arith.cmpf oge, %16, %18 : vector<4x8x1xf32>
    %20 = vector.extract_strided_slice %13 {offsets = [0, 0, 0], sizes = [4, 1, 1], strides = [1, 1, 1]} : vector<4x6x1xf32> to vector<4x1x1xf32>
    %21 = vector.broadcast %20 : vector<4x1x1xf32> to vector<4x8x1xf32>
    %22 = arith.mulf %16, %21 : vector<4x8x1xf32>
    %23 = vector.extract_strided_slice %15 {offsets = [0, 0, 0], sizes = [4, 1, 1], strides = [1, 1, 1]} : vector<4x6x1xf32> to vector<4x1x1xf32>
    %24 = vector.broadcast %23 : vector<4x1x1xf32> to vector<4x8x1xf32>
    %25 = arith.mulf %16, %24 : vector<4x8x1xf32>
    %26 = arith.select %19, %22, %25 : vector<4x8x1xi1>, vector<4x8x1xf32>
    %27 = vector.broadcast %16 : vector<4x8x1xf32> to vector<4x8x8xf32>
    %28 = vector.broadcast %17 : vector<4x1x8xf32> to vector<4x8x8xf32>
    %29 = arith.mulf %27, %28 : vector<4x8x8xf32>
    %30 = vector.broadcast %26 : vector<4x8x1xf32> to vector<4x8x8xf32>
    %31 = arith.subf %29, %30 : vector<4x8x8xf32>
    %32 = math.exp %31 : vector<4x8x8xf32>
    %cst_16 = arith.constant dense<0.000000e+00> : vector<4x8xf32>
    %33 = vector.multi_reduction <add>, %32, %cst_16 [2] : vector<4x8x8xf32> to vector<4x8xf32>
    %34 = vector.shape_cast %33 : vector<4x8xf32> to vector<4x8x1xf32>
    %35 = tpu.reciprocal %34 {approx = true} : vector<4x8x1xf32> -> vector<4x8x1xf32>
    %36 = arith.mulf %34, %35 : vector<4x8x1xf32>
    %cst_17 = arith.constant 2.000000e+00 : f32
    %37 = vector.broadcast %cst_17 : f32 to vector<4x8x1xf32>
    %38 = arith.subf %37, %36 : vector<4x8x1xf32>
    %39 = arith.mulf %35, %38 : vector<4x8x1xf32>
    %c0_18 = arith.constant 0 : index
    %c0_19 = arith.constant 0 : index
    %c0_20 = arith.constant 0 : index
    %40 = vector.load %arg7[%c0_18, %c0_19, %c0_20] : memref<4x8x128xf32, #tpu.memory_space<vmem>>, vector<4x8x16xf32>
    "tpu.trace_start"() <{level = 10 : i32, message = "bij,bjd->bid"}> : () -> ()
    %cst_21 = arith.constant dense<0.000000e+00> : vector<4x8x16xf32>
    %41 = tpu.matmul %32, %40, %cst_21 {dimension_numbers = #tpu.dot_dimension_numbers<[2], [1], [1], [2], [0, 0, 0, 1, 1, 2], [0], [0]>} : vector<4x8x8xf32>, vector<4x8x16xf32>, vector<4x8x16xf32> -> vector<4x8x16xf32>
    "tpu.trace_stop"() : () -> ()
    %42 = vector.broadcast %39 : vector<4x8x1xf32> to vector<4x8x16xf32>
    %43 = arith.mulf %41, %42 : vector<4x8x16xf32>
    %c0_22 = arith.constant 0 : index
    %c0_23 = arith.constant 0 : index
    %c0_24 = arith.constant 0 : index
    %44 = vector.load %arg8[%c0_22, %c0_23, %c0_24] : memref<4x8x96xf32, #tpu.memory_space<vmem>>, vector<4x8x16xf32>
    tpu.vector_store %arg8[%c0_22, %c0_23, %c0_24], %43 {strides = array<i32>} : memref<4x8x96xf32, #tpu.memory_space<vmem>>, vector<4x8x16xf32>,
    %45 = vector.extract_strided_slice %9 {offsets = [0, 0, 1], sizes = [4, 8, 1], strides = [1, 1, 1]} : vector<4x8x6xf32> to vector<4x8x1xf32>
    %46 = vector.extract_strided_slice %11 {offsets = [0, 1, 0], sizes = [4, 1, 8], strides = [1, 1, 1]} : vector<4x6x8xf32> to vector<4x1x8xf32>
    %cst_25 = arith.constant 0.000000e+00 : f32
    %47 = vector.broadcast %cst_25 : f32 to vector<4x8x1xf32>
    %48 = arith.cmpf oge, %45, %47 : vector<4x8x1xf32>
    %49 = vector.extract_strided_slice %13 {offsets = [0, 1, 0], sizes = [4, 1, 1], strides = [1, 1, 1]} : vector<4x6x1xf32> to vector<4x1x1xf32>
    %50 = vector.broadcast %49 : vector<4x1x1xf32> to vector<4x8x1xf32>
    %51 = arith.mulf %45, %50 : vector<4x8x1xf32>
    %52 = vector.extract_strided_slice %15 {offsets = [0, 1, 0], sizes = [4, 1, 1], strides = [1, 1, 1]} : vector<4x6x1xf32> to vector<4x1x1xf32>
    %53 = vector.broadcast %52 : vector<4x1x1xf32> to vector<4x8x1xf32>
    %54 = arith.mulf %45, %53 : vector<4x8x1xf32>
    %55 = arith.select %48, %51, %54 : vector<4x8x1xi1>, vector<4x8x1xf32>
    %56 = vector.broadcast %45 : vector<4x8x1xf32> to vector<4x8x8xf32>
    %57 = vector.broadcast %46 : vector<4x1x8xf32> to vector<4x8x8xf32>
    %58 = arith.mulf %56, %57 : vector<4x8x8xf32>
    %59 = vector.broadcast %55 : vector<4x8x1xf32> to vector<4x8x8xf32>
    %60 = arith.subf %58, %59 : vector<4x8x8xf32>
    %61 = math.exp %60 : vector<4x8x8xf32>
    %cst_26 = arith.constant dense<0.000000e+00> : vector<4x8xf32>
    %62 = vector.multi_reduction <add>, %61, %cst_26 [2] : vector<4x8x8xf32> to vector<4x8xf32>
    %63 = vector.shape_cast %62 : vector<4x8xf32> to vector<4x8x1xf32>
    %64 = tpu.reciprocal %63 {approx = true} : vector<4x8x1xf32> -> vector<4x8x1xf32>
    %65 = arith.mulf %63, %64 : vector<4x8x1xf32>
    %cst_27 = arith.constant 2.000000e+00 : f32
    %66 = vector.broadcast %cst_27 : f32 to vector<4x8x1xf32>
    %67 = arith.subf %66, %65 : vector<4x8x1xf32>
    %68 = arith.mulf %64, %67 : vector<4x8x1xf32>
    %c0_28 = arith.constant 0 : index
    %c0_29 = arith.constant 0 : index
    %c16 = arith.constant 16 : index
    %69 = vector.load %arg7[%c0_28, %c0_29, %c16] : memref<4x8x128xf32, #tpu.memory_space<vmem>>, vector<4x8x16xf32>
    "tpu.trace_start"() <{level = 10 : i32, message = "bij,bjd->bid"}> : () -> ()
    %cst_30 = arith.constant dense<0.000000e+00> : vector<4x8x16xf32>
    %70 = tpu.matmul %61, %69, %cst_30 {dimension_numbers = #tpu.dot_dimension_numbers<[2], [1], [1], [2], [0, 0, 0, 1, 1, 2], [0], [0]>} : vector<4x8x8xf32>, vector<4x8x16xf32>, vector<4x8x16xf32> -> vector<4x8x16xf32>
    "tpu.trace_stop"() : () -> ()
    %71 = vector.broadcast %68 : vector<4x8x1xf32> to vector<4x8x16xf32>
    %72 = arith.mulf %70, %71 : vector<4x8x16xf32>
    %c0_31 = arith.constant 0 : index
    %c0_32 = arith.constant 0 : index
    %c16_33 = arith.constant 16 : index
    %73 = vector.load %arg8[%c0_31, %c0_32, %c16_33] : memref<4x8x96xf32, #tpu.memory_space<vmem>>, vector<4x8x16xf32>
    tpu.vector_store %arg8[%c0_31, %c0_32, %c16_33], %72 {strides = array<i32>} : memref<4x8x96xf32, #tpu.memory_space<vmem>>, vector<4x8x16xf32>,
    %74 = vector.extract_strided_slice %9 {offsets = [0, 0, 2], sizes = [4, 8, 1], strides = [1, 1, 1]} : vector<4x8x6xf32> to vector<4x8x1xf32>
    %75 = vector.extract_strided_slice %11 {offsets = [0, 2, 0], sizes = [4, 1, 8], strides = [1, 1, 1]} : vector<4x6x8xf32> to vector<4x1x8xf32>
    %cst_34 = arith.constant 0.000000e+00 : f32
    %76 = vector.broadcast %cst_34 : f32 to vector<4x8x1xf32>
    %77 = arith.cmpf oge, %74, %76 : vector<4x8x1xf32>
    %78 = vector.extract_strided_slice %13 {offsets = [0, 2, 0], sizes = [4, 1, 1], strides = [1, 1, 1]} : vector<4x6x1xf32> to vector<4x1x1xf32>
    %79 = vector.broadcast %78 : vector<4x1x1xf32> to vector<4x8x1xf32>
    %80 = arith.mulf %74, %79 : vector<4x8x1xf32>
    %81 = vector.extract_strided_slice %15 {offsets = [0, 2, 0], sizes = [4, 1, 1], strides = [1, 1, 1]} : vector<4x6x1xf32> to vector<4x1x1xf32>
    %82 = vector.broadcast %81 : vector<4x1x1xf32> to vector<4x8x1xf32>
    %83 = arith.mulf %74, %82 : vector<4x8x1xf32>
    %84 = arith.select %77, %80, %83 : vector<4x8x1xi1>, vector<4x8x1xf32>
    %85 = vector.broadcast %74 : vector<4x8x1xf32> to vector<4x8x8xf32>
    %86 = vector.broadcast %75 : vector<4x1x8xf32> to vector<4x8x8xf32>
    %87 = arith.mulf %85, %86 : vector<4x8x8xf32>
    %88 = vector.broadcast %84 : vector<4x8x1xf32> to vector<4x8x8xf32>
    %89 = arith.subf %87, %88 : vector<4x8x8xf32>
    %90 = math.exp %89 : vector<4x8x8xf32>
    %cst_35 = arith.constant dense<0.000000e+00> : vector<4x8xf32>
    %91 = vector.multi_reduction <add>, %90, %cst_35 [2] : vector<4x8x8xf32> to vector<4x8xf32>
    %92 = vector.shape_cast %91 : vector<4x8xf32> to vector<4x8x1xf32>
    %93 = tpu.reciprocal %92 {approx = true} : vector<4x8x1xf32> -> vector<4x8x1xf32>
    %94 = arith.mulf %92, %93 : vector<4x8x1xf32>
    %cst_36 = arith.constant 2.000000e+00 : f32
    %95 = vector.broadcast %cst_36 : f32 to vector<4x8x1xf32>
    %96 = arith.subf %95, %94 : vector<4x8x1xf32>
    %97 = arith.mulf %93, %96 : vector<4x8x1xf32>
    %c0_37 = arith.constant 0 : index
    %c0_38 = arith.constant 0 : index
    %c32 = arith.constant 32 : index
    %98 = vector.load %arg7[%c0_37, %c0_38, %c32] : memref<4x8x128xf32, #tpu.memory_space<vmem>>, vector<4x8x16xf32>
    "tpu.trace_start"() <{level = 10 : i32, message = "bij,bjd->bid"}> : () -> ()
    %cst_39 = arith.constant dense<0.000000e+00> : vector<4x8x16xf32>
    %99 = tpu.matmul %90, %98, %cst_39 {dimension_numbers = #tpu.dot_dimension_numbers<[2], [1], [1], [2], [0, 0, 0, 1, 1, 2], [0], [0]>} : vector<4x8x8xf32>, vector<4x8x16xf32>, vector<4x8x16xf32> -> vector<4x8x16xf32>
    "tpu.trace_stop"() : () -> ()
    %100 = vector.broadcast %97 : vector<4x8x1xf32> to vector<4x8x16xf32>
    %101 = arith.mulf %99, %100 : vector<4x8x16xf32>
    %c0_40 = arith.constant 0 : index
    %c0_41 = arith.constant 0 : index
    %c32_42 = arith.constant 32 : index
    %102 = vector.load %arg8[%c0_40, %c0_41, %c32_42] : memref<4x8x96xf32, #tpu.memory_space<vmem>>, vector<4x8x16xf32>
    tpu.vector_store %arg8[%c0_40, %c0_41, %c32_42], %101 {strides = array<i32>} : memref<4x8x96xf32, #tpu.memory_space<vmem>>, vector<4x8x16xf32>,
    %103 = vector.extract_strided_slice %9 {offsets = [0, 0, 3], sizes = [4, 8, 1], strides = [1, 1, 1]} : vector<4x8x6xf32> to vector<4x8x1xf32>
    %104 = vector.extract_strided_slice %11 {offsets = [0, 3, 0], sizes = [4, 1, 8], strides = [1, 1, 1]} : vector<4x6x8xf32> to vector<4x1x8xf32>
    %cst_43 = arith.constant 0.000000e+00 : f32
    %105 = vector.broadcast %cst_43 : f32 to vector<4x8x1xf32>
    %106 = arith.cmpf oge, %103, %105 : vector<4x8x1xf32>
    %107 = vector.extract_strided_slice %13 {offsets = [0, 3, 0], sizes = [4, 1, 1], strides = [1, 1, 1]} : vector<4x6x1xf32> to vector<4x1x1xf32>
    %108 = vector.broadcast %107 : vector<4x1x1xf32> to vector<4x8x1xf32>
    %109 = arith.mulf %103, %108 : vector<4x8x1xf32>
    %110 = vector.extract_strided_slice %15 {offsets = [0, 3, 0], sizes = [4, 1, 1], strides = [1, 1, 1]} : vector<4x6x1xf32> to vector<4x1x1xf32>
    %111 = vector.broadcast %110 : vector<4x1x1xf32> to vector<4x8x1xf32>
    %112 = arith.mulf %103, %111 : vector<4x8x1xf32>
    %113 = arith.select %106, %109, %112 : vector<4x8x1xi1>, vector<4x8x1xf32>
    %114 = vector.broadcast %103 : vector<4x8x1xf32> to vector<4x8x8xf32>
    %115 = vector.broadcast %104 : vector<4x1x8xf32> to vector<4x8x8xf32>
    %116 = arith.mulf %114, %115 : vector<4x8x8xf32>
    %117 = vector.broadcast %113 : vector<4x8x1xf32> to vector<4x8x8xf32>
    %118 = arith.subf %116, %117 : vector<4x8x8xf32>
    %119 = math.exp %118 : vector<4x8x8xf32>
    %cst_44 = arith.constant dense<0.000000e+00> : vector<4x8xf32>
    %120 = vector.multi_reduction <add>, %119, %cst_44 [2] : vector<4x8x8xf32> to vector<4x8xf32>
    %121 = vector.shape_cast %120 : vector<4x8xf32> to vector<4x8x1xf32>
    %122 = tpu.reciprocal %121 {approx = true} : vector<4x8x1xf32> -> vector<4x8x1xf32>
    %123 = arith.mulf %121, %122 : vector<4x8x1xf32>
    %cst_45 = arith.constant 2.000000e+00 : f32
    %124 = vector.broadcast %cst_45 : f32 to vector<4x8x1xf32>
    %125 = arith.subf %124, %123 : vector<4x8x1xf32>
    %126 = arith.mulf %122, %125 : vector<4x8x1xf32>
    %c0_46 = arith.constant 0 : index
    %c0_47 = arith.constant 0 : index
    %c48 = arith.constant 48 : index
    %127 = vector.load %arg7[%c0_46, %c0_47, %c48] : memref<4x8x128xf32, #tpu.memory_space<vmem>>, vector<4x8x16xf32>
    "tpu.trace_start"() <{level = 10 : i32, message = "bij,bjd->bid"}> : () -> ()
    %cst_48 = arith.constant dense<0.000000e+00> : vector<4x8x16xf32>
    %128 = tpu.matmul %119, %127, %cst_48 {dimension_numbers = #tpu.dot_dimension_numbers<[2], [1], [1], [2], [0, 0, 0, 1, 1, 2], [0], [0]>} : vector<4x8x8xf32>, vector<4x8x16xf32>, vector<4x8x16xf32> -> vector<4x8x16xf32>
    "tpu.trace_stop"() : () -> ()
    %129 = vector.broadcast %126 : vector<4x8x1xf32> to vector<4x8x16xf32>
    %130 = arith.mulf %128, %129 : vector<4x8x16xf32>
    %c0_49 = arith.constant 0 : index
    %c0_50 = arith.constant 0 : index
    %c48_51 = arith.constant 48 : index
    %131 = vector.load %arg8[%c0_49, %c0_50, %c48_51] : memref<4x8x96xf32, #tpu.memory_space<vmem>>, vector<4x8x16xf32>
    tpu.vector_store %arg8[%c0_49, %c0_50, %c48_51], %130 {strides = array<i32>} : memref<4x8x96xf32, #tpu.memory_space<vmem>>, vector<4x8x16xf32>,
    %132 = vector.extract_strided_slice %9 {offsets = [0, 0, 4], sizes = [4, 8, 1], strides = [1, 1, 1]} : vector<4x8x6xf32> to vector<4x8x1xf32>
    %133 = vector.extract_strided_slice %11 {offsets = [0, 4, 0], sizes = [4, 1, 8], strides = [1, 1, 1]} : vector<4x6x8xf32> to vector<4x1x8xf32>
    %cst_52 = arith.constant 0.000000e+00 : f32
    %134 = vector.broadcast %cst_52 : f32 to vector<4x8x1xf32>
    %135 = arith.cmpf oge, %132, %134 : vector<4x8x1xf32>
    %136 = vector.extract_strided_slice %13 {offsets = [0, 4, 0], sizes = [4, 1, 1], strides = [1, 1, 1]} : vector<4x6x1xf32> to vector<4x1x1xf32>
    %137 = vector.broadcast %136 : vector<4x1x1xf32> to vector<4x8x1xf32>
    %138 = arith.mulf %132, %137 : vector<4x8x1xf32>
    %139 = vector.extract_strided_slice %15 {offsets = [0, 4, 0], sizes = [4, 1, 1], strides = [1, 1, 1]} : vector<4x6x1xf32> to vector<4x1x1xf32>
    %140 = vector.broadcast %139 : vector<4x1x1xf32> to vector<4x8x1xf32>
    %141 = arith.mulf %132, %140 : vector<4x8x1xf32>
    %142 = arith.select %135, %138, %141 : vector<4x8x1xi1>, vector<4x8x1xf32>
    %143 = vector.broadcast %132 : vector<4x8x1xf32> to vector<4x8x8xf32>
    %144 = vector.broadcast %133 : vector<4x1x8xf32> to vector<4x8x8xf32>
    %145 = arith.mulf %143, %144 : vector<4x8x8xf32>
    %146 = vector.broadcast %142 : vector<4x8x1xf32> to vector<4x8x8xf32>
    %147 = arith.subf %145, %146 : vector<4x8x8xf32>
    %148 = math.exp %147 : vector<4x8x8xf32>
    %cst_53 = arith.constant dense<0.000000e+00> : vector<4x8xf32>
    %149 = vector.multi_reduction <add>, %148, %cst_53 [2] : vector<4x8x8xf32> to vector<4x8xf32>
    %150 = vector.shape_cast %149 : vector<4x8xf32> to vector<4x8x1xf32>
    %151 = tpu.reciprocal %150 {approx = true} : vector<4x8x1xf32> -> vector<4x8x1xf32>
    %152 = arith.mulf %150, %151 : vector<4x8x1xf32>
    %cst_54 = arith.constant 2.000000e+00 : f32
    %153 = vector.broadcast %cst_54 : f32 to vector<4x8x1xf32>
    %154 = arith.subf %153, %152 : vector<4x8x1xf32>
    %155 = arith.mulf %151, %154 : vector<4x8x1xf32>
    %c0_55 = arith.constant 0 : index
    %c0_56 = arith.constant 0 : index
    %c64 = arith.constant 64 : index
    %156 = vector.load %arg7[%c0_55, %c0_56, %c64] : memref<4x8x128xf32, #tpu.memory_space<vmem>>, vector<4x8x16xf32>
    "tpu.trace_start"() <{level = 10 : i32, message = "bij,bjd->bid"}> : () -> ()
    %cst_57 = arith.constant dense<0.000000e+00> : vector<4x8x16xf32>
    %157 = tpu.matmul %148, %156, %cst_57 {dimension_numbers = #tpu.dot_dimension_numbers<[2], [1], [1], [2], [0, 0, 0, 1, 1, 2], [0], [0]>} : vector<4x8x8xf32>, vector<4x8x16xf32>, vector<4x8x16xf32> -> vector<4x8x16xf32>
    "tpu.trace_stop"() : () -> ()
    %158 = vector.broadcast %155 : vector<4x8x1xf32> to vector<4x8x16xf32>
    %159 = arith.mulf %157, %158 : vector<4x8x16xf32>
    %c0_58 = arith.constant 0 : index
    %c0_59 = arith.constant 0 : index
    %c64_60 = arith.constant 64 : index
    %160 = vector.load %arg8[%c0_58, %c0_59, %c64_60] : memref<4x8x96xf32, #tpu.memory_space<vmem>>, vector<4x8x16xf32>
    tpu.vector_store %arg8[%c0_58, %c0_59, %c64_60], %159 {strides = array<i32>} : memref<4x8x96xf32, #tpu.memory_space<vmem>>, vector<4x8x16xf32>,
    %161 = vector.extract_strided_slice %9 {offsets = [0, 0, 5], sizes = [4, 8, 1], strides = [1, 1, 1]} : vector<4x8x6xf32> to vector<4x8x1xf32>
    %162 = vector.extract_strided_slice %11 {offsets = [0, 5, 0], sizes = [4, 1, 8], strides = [1, 1, 1]} : vector<4x6x8xf32> to vector<4x1x8xf32>
    %cst_61 = arith.constant 0.000000e+00 : f32
    %163 = vector.broadcast %cst_61 : f32 to vector<4x8x1xf32>
    %164 = arith.cmpf oge, %161, %163 : vector<4x8x1xf32>
    %165 = vector.extract_strided_slice %13 {offsets = [0, 5, 0], sizes = [4, 1, 1], strides = [1, 1, 1]} : vector<4x6x1xf32> to vector<4x1x1xf32>
    %166 = vector.broadcast %165 : vector<4x1x1xf32> to vector<4x8x1xf32>
    %167 = arith.mulf %161, %166 : vector<4x8x1xf32>
    %168 = vector.extract_strided_slice %15 {offsets = [0, 5, 0], sizes = [4, 1, 1], strides = [1, 1, 1]} : vector<4x6x1xf32> to vector<4x1x1xf32>
    %169 = vector.broadcast %168 : vector<4x1x1xf32> to vector<4x8x1xf32>
    %170 = arith.mulf %161, %169 : vector<4x8x1xf32>
    %171 = arith.select %164, %167, %170 : vector<4x8x1xi1>, vector<4x8x1xf32>
    %172 = vector.broadcast %161 : vector<4x8x1xf32> to vector<4x8x8xf32>
    %173 = vector.broadcast %162 : vector<4x1x8xf32> to vector<4x8x8xf32>
    %174 = arith.mulf %172, %173 : vector<4x8x8xf32>
    %175 = vector.broadcast %171 : vector<4x8x1xf32> to vector<4x8x8xf32>
    %176 = arith.subf %174, %175 : vector<4x8x8xf32>
    %177 = math.exp %176 : vector<4x8x8xf32>
    %cst_62 = arith.constant dense<0.000000e+00> : vector<4x8xf32>
    %178 = vector.multi_reduction <add>, %177, %cst_62 [2] : vector<4x8x8xf32> to vector<4x8xf32>
    %179 = vector.shape_cast %178 : vector<4x8xf32> to vector<4x8x1xf32>
    %180 = tpu.reciprocal %179 {approx = true} : vector<4x8x1xf32> -> vector<4x8x1xf32>
    %181 = arith.mulf %179, %180 : vector<4x8x1xf32>
    %cst_63 = arith.constant 2.000000e+00 : f32
    %182 = vector.broadcast %cst_63 : f32 to vector<4x8x1xf32>
    %183 = arith.subf %182, %181 : vector<4x8x1xf32>
    %184 = arith.mulf %180, %183 : vector<4x8x1xf32>
    %c0_64 = arith.constant 0 : index
    %c0_65 = arith.constant 0 : index
    %c80 = arith.constant 80 : index
    %185 = vector.load %arg7[%c0_64, %c0_65, %c80] : memref<4x8x128xf32, #tpu.memory_space<vmem>>, vector<4x8x16xf32>
    "tpu.trace_start"() <{level = 10 : i32, message = "bij,bjd->bid"}> : () -> ()
    %cst_66 = arith.constant dense<0.000000e+00> : vector<4x8x16xf32>
    %186 = tpu.matmul %177, %185, %cst_66 {dimension_numbers = #tpu.dot_dimension_numbers<[2], [1], [1], [2], [0, 0, 0, 1, 1, 2], [0], [0]>} : vector<4x8x8xf32>, vector<4x8x16xf32>, vector<4x8x16xf32> -> vector<4x8x16xf32>
    "tpu.trace_stop"() : () -> ()
    %187 = vector.broadcast %184 : vector<4x8x1xf32> to vector<4x8x16xf32>
    %188 = arith.mulf %186, %187 : vector<4x8x16xf32>
    %c0_67 = arith.constant 0 : index
    %c0_68 = arith.constant 0 : index
    %c80_69 = arith.constant 80 : index
    %189 = vector.load %arg8[%c0_67, %c0_68, %c80_69] : memref<4x8x96xf32, #tpu.memory_space<vmem>>, vector<4x8x16xf32>
    tpu.vector_store %arg8[%c0_67, %c0_68, %c80_69], %188 {strides = array<i32>} : memref<4x8x96xf32, #tpu.memory_space<vmem>>, vector<4x8x16xf32>,
    %c0_70 = arith.constant 0 : index
    %c0_71 = arith.constant 0 : index
    %c0_72 = arith.constant 0 : index
    %190 = vector.load %arg8[%c0_70, %c0_71, %c0_72] : memref<4x8x96xf32, #tpu.memory_space<vmem>>, vector<4x8x96xf32>
    %191 = vector.shape_cast %190 : vector<4x8x96xf32> to vector<32x96xf32>
    %c0_73 = arith.constant 0 : index
    %c0_74 = arith.constant 0 : index
    %192 = vector.load %arg4[%c0_73, %c0_74] : memref<96x384xf32, #tpu.memory_space<vmem>>, vector<96x384xf32>
    %cst_75 = arith.constant dense<0.000000e+00> : vector<32x384xf32>
    %193 = tpu.matmul %191, %192, %cst_75 {dimension_numbers = #tpu.dot_dimension_numbers<[1], [0], [0], [1], [0, 0, 1, 1], [], []>} : vector<32x96xf32>, vector<96x384xf32>, vector<32x384xf32> -> vector<32x384xf32>
    %c0_76 = arith.constant 0 : index
    %c0_77 = arith.constant 0 : index
    %194 = vector.load %arg5[%c0_76, %c0_77] : memref<1x384xf32, #tpu.memory_space<vmem>>, vector<1x384xf32>
    %195 = vector.broadcast %194 : vector<1x384xf32> to vector<32x384xf32>
    %196 = arith.addf %193, %195 : vector<32x384xf32>
    %197 = vector.shape_cast %196 : vector<32x384xf32> to vector<4x8x384xf32>
    %c0_78 = arith.constant 0 : index
    %c0_79 = arith.constant 0 : index
    %c0_80 = arith.constant 0 : index
    %198 = vector.load %arg6[%c0_78, %c0_79, %c0_80] : memref<4x8x384xf32, #tpu.memory_space<vmem>>, vector<4x8x384xf32>
    tpu.vector_store %arg6[%c0_78, %c0_79, %c0_80], %197 {strides = array<i32>} : memref<4x8x384xf32, #tpu.memory_space<vmem>>, vector<4x8x384xf32>,
    return
  }
  func.func @transform_0(%arg0: i32) -> (i32, i32, i32) {
    %c0_i32 = arith.constant 0 : i32
    %c0_i32_0 = arith.constant 0 : i32
    %c0_i32_1 = arith.constant 0 : i32
    return %arg0, %c0_i32, %c0_i32_0 : i32, i32, i32
  }
  func.func @transform_1(%arg0: i32) -> (i32, i32) {
    %c0_i32 = arith.constant 0 : i32
    %c0_i32_0 = arith.constant 0 : i32
    %c0_i32_1 = arith.constant 0 : i32
    return %c0_i32, %c0_i32_0 : i32, i32
  }
  func.func @transform_2(%arg0: i32) -> (i32, i32) {
    %c0_i32 = arith.constant 0 : i32
    %c0_i32_0 = arith.constant 0 : i32
    %c0_i32_1 = arith.constant 0 : i32
    return %c0_i32, %c0_i32_0 : i32, i32
  }
  func.func @transform_3(%arg0: i32) -> (i32, i32) {
    %c0_i32 = arith.constant 0 : i32
    %c0_i32_0 = arith.constant 0 : i32
    %c0_i32_1 = arith.constant 0 : i32
    return %c0_i32, %c0_i32_0 : i32, i32
  }
  func.func @transform_4(%arg0: i32) -> (i32, i32) {
    %c0_i32 = arith.constant 0 : i32
    %c0_i32_0 = arith.constant 0 : i32
    %c0_i32_1 = arith.constant 0 : i32
    return %c0_i32, %c0_i32_0 : i32, i32
  }
  func.func @transform_5(%arg0: i32) -> (i32, i32, i32) {
    %c0_i32 = arith.constant 0 : i32
    %c0_i32_0 = arith.constant 0 : i32
    %c0_i32_1 = arith.constant 0 : i32
    return %arg0, %c0_i32, %c0_i32_0 : i32, i32, i32
  }
}

</mosaic_0001>

<bundles_post_ra>
// kernel: tpu_custom_call.1
= control target key start
LH: loop header
LB: loop body
LE: loop exit
PB: predicated region body
PF: predicated region fallthrough
CT: control target
= control target key end

     0   :  { %10 = vsyncpa [#allocation5], 0  ;;  %s5229_s0 = inlined_call_operand.hbm [shape: f32[4,8,384], index: 0, kind: input, shape index: {}]   ;;  %s5230_s1 = inlined_call_operand.hbm [shape: f32[384,128], index: 1, kind: input, shape index: {}]   ;;  %s5231_s2 = inlined_call_operand.vmem [shape: f32[1,128], index: 2, kind: input, shape index: {}]   ;;  %s5232_s3 = inlined_call_operand.hbm [shape: f32[96,384], index: 3, kind: input, shape index: {}]   ;;  %s5233_s4 = inlined_call_operand.vmem [shape: f32[1,384], index: 4, kind: input, shape index: {}]   ;;  %s5234_s5 = inlined_call_operand.hbm [shape: f32[4,8,384], index: 5, kind: output, shape index: {}]  }
   0x1   :  { %11 = vsyncpa [#allocation8], 0 }
   0x2   :  { %12 = vsyncpa [#allocation6], 0  ;;  %s4294_s18 = smov [#allocation7]   ;;  %s4200_s22 = scalar_lea.hbm %s5230_s1, 6144 }
   0x3   :  { %s30_s19 = sshll.u32 %s4294_s18, 4  ;;  %p4201_p0 = scmp.ne.s32.totalorder %s5230_s1, %s4200_s22  ;;  %s31_s19 = int_to_ptr.vmem [resolvable:$true] %s30_s19 }
   0x4   :  { %p4204_p1 = scmp.lt.u32.totalorder %s4200_s22, %s5230_s1 }
   0x6   :  { %p4206_p2 = pnand %p4204_p1, %p4201_p0 }
   0x8   :  { %4209 = shalt.err (!%p4206_p2)
}
   0x9   :  { %s4210_s27 = scalar_lea.vmem %s31_s19, 6144  ;;  %p4215_p4 = scmp.lt.s32.totalorder %s31_s19, %s31_s19 }
   0xa   :  { %p4211_p3 = scmp.ne.s32.totalorder %s31_s19, %s4210_s27  ;;  %p4216_p5 = scmp.lt.s32.totalorder %s4210_s27, %s4210_s27 }
   0xc   :  { %p4217_p6 = por %p4216_p5, %p4215_p4 }
   0xe   :  { %p4218_p7 = pnand %p4217_p6, %p4211_p3 }
  0x10   :  { %4221 = shalt.err (!%p4218_p7)
}
  0x11   :  { %s4295_s28 = smov 128   ;;  %s4296_s29 = smov 8  }
  0x12   :  { %36 = dma.hbm_to_vmem [thread:$0]  %s5230_s1, 6144, %s31_s19, [#allocation8], %s4295_s28, %s4295_s28, %s4296_s29  }
  0x13   :  { %s4297_s7 = smov [#allocation4]   ;;  %s4222_s11 = scalar_lea.hbm %s5229_s0, 1536 }
  0x14   :  { %s18_s8 = sshll.u32 %s4297_s7, 4  ;;  %p4223_p8 = scmp.ne.s32.totalorder %s5229_s0, %s4222_s11  ;;  %s19_s8 = int_to_ptr.vmem [resolvable:$true] %s18_s8 }
  0x15   :  { %p4226_p9 = scmp.lt.u32.totalorder %s4222_s11, %s5229_s0 }
  0x17   :  { %p4228_p10 = pnand %p4226_p9, %p4223_p8 }
  0x19   :  { %4231 = shalt.err (!%p4228_p10)
}
  0x1a   :  { %s4232_s16 = scalar_lea.vmem %s19_s8, 1536  ;;  %p4237_p12 = scmp.lt.s32.totalorder %s19_s8, %s19_s8 }
  0x1b   :  { %p4233_p11 = scmp.ne.s32.totalorder %s19_s8, %s4232_s16  ;;  %p4238_p13 = scmp.lt.s32.totalorder %s4232_s16, %s4232_s16 }
  0x1d   :  { %p4239_p0 = por %p4238_p13, %p4237_p12 }
  0x1f   :  { %p4240_p1 = pnand %p4239_p0, %p4233_p11 }
  0x21   :  { %4243 = shalt.err (!%p4240_p1)
}
  0x22   :  { %s4298_s1 = smov 384   ;;  %s4299_s17 = smov 24  }
  0x23   :  { %24 = dma.hbm_to_vmem [thread:$0]  %s5229_s0, 1536, %s19_s8, [#allocation5], %s4298_s1, %s4298_s1, %s4299_s17  }
  0x24   :  { %s4300_s20 = smov [#allocation9]   ;;  %s4244_s24 = scalar_lea.hbm %s5232_s3, 4608 }
  0x25   :  { %s44_s21 = sshll.u32 %s4300_s20, 4  ;;  %p4245_p2 = scmp.ne.s32.totalorder %s5232_s3, %s4244_s24  ;;  %s45_s21 = int_to_ptr.vmem [resolvable:$true] %s44_s21 }
  0x26   :  { %p4248_p3 = scmp.lt.u32.totalorder %s4244_s24, %s5232_s3 }
  0x28   :  { %p4250_p4 = pnand %p4248_p3, %p4245_p2 }
  0x2a   :  { %4253 = shalt.err (!%p4250_p4)
}
  0x2b   :  { %s4254_s29 = scalar_lea.vmem %s45_s21, 4608  ;;  %p4259_p6 = scmp.lt.s32.totalorder %s45_s21, %s45_s21 }
  0x2c   :  { %p4255_p5 = scmp.ne.s32.totalorder %s45_s21, %s4254_s29  ;;  %p4260_p7 = scmp.lt.s32.totalorder %s4254_s29, %s4254_s29 }
  0x2e   :  { %p4261_p8 = por %p4260_p7, %p4259_p6 }
  0x30   :  { %p4262_p9 = pnand %p4261_p8, %p4255_p5 }
  0x32   :  { %4265 = shalt.err (!%p4262_p9)
}
  0x33   :  { %50 = dma.hbm_to_vmem [thread:$0]  %s5232_s3, 4608, %s45_s21, [#allocation8], %s4298_s1, %s4298_s1, %s4299_s17  }
  0x34   :  { %4288 = dma.done.wait [#allocation5], 1536  }
  0x35   :  { %4289 = vsyncadd [#allocation5], 4294965760 }
  0x36   :  { %4290 = dma.done.wait [#allocation8], 10752  }
  0x37   :  { %4291 = vsyncadd [#allocation8], 4294956544  ;;  %v90_v0 = vld [vmem:[#allocation7 + $0x80] sm:$0xff]  ;;  %v91_v1 = vld [vmem:[#allocation7 + $0x88] sm:$0xff]  ;;  %s4304_s7 = smov 26   ;;  %vm451_vm0 = vcmask 62464  }
  0x38   :  { %v74_v2 = vld [vmem:[#allocation7] sm:$0xff]  ;;  %v3930_v3 = vpack.c.bf16 %v91_v1, %v90_v0  ;;  %v75_v4 = vld [vmem:[#allocation7 + $0x8] sm:$0xff]  ;;  %v92_v9 = vld [vmem:[#allocation7 + $0x90] sm:$0xff]  ;;  %vm4309_vm3 = vmmov 0   ;;  %s4310_s8 = smov 96   ;;  %s4312_s9 = smov 80  }
  0x39   :  { %v106_v5 = vld [vmem:[#allocation7 + $0x100] sm:$0xff]  ;;  %v107_v6 = vld [vmem:[#allocation7 + $0x108] sm:$0xff]  ;;  %v3932_v7 = vpack.c.bf16 %v75_v4, %v74_v2  ;;  %v93_v10 = vld [vmem:[#allocation7 + $0x98] sm:$0xff]  ;;  %s4313_s10 = smov 64   ;;  %s4314_s11 = smov 48   ;;  %vm592_vm6 = vcmask 64512  }
  0x3a   :  { %v3962_v8 = vpack.c.bf16 %v107_v6, %v106_v5  ;;  %v76_v11 = vld [vmem:[#allocation7 + $0x10] sm:$0xff]  ;;  %3931 = vmatprep.subr.bf16.mxu0 %v3930_v3  ;;  %v3934_v12 = vpack.c.bf16 %v93_v10, %v92_v9  ;;  %v77_v13 = vld [vmem:[#allocation7 + $0x18] sm:$0xff]  ;;  %v94_v18 = vld [vmem:[#allocation7 + $0xa0] sm:$0xff]  ;;  %s4315_s12 = smov 16   ;;  %vm917_vm7 = vcmask 130048   ;;  %s4316_s13 = smov 32  }
  0x3b   :  { %v108_v14 = vld [vmem:[#allocation7 + $0x110] sm:$0xff]  ;;  %v109_v15 = vld [vmem:[#allocation7 + $0x118] sm:$0xff]  ;;  %3933 = vmatpush3.bf16.msra.mxu0 %v3932_v7  ;;  %v3936_v16 = vpack.c.bf16 %v77_v13, %v76_v11  ;;  %v95_v19 = vld [vmem:[#allocation7 + $0xa8] sm:$0xff]  ;;  %vm1394_vm8 = vcmask 261248   ;;  %vm1871_vm9 = vcmask 392448   ;;  %vm2348_vm10 = vcmask 523648  }
  0x3c   :  { %3963 = vmatprep.subr.bf16.mxu1 %v3962_v8  ;;  %v3966_v17 = vpack.c.bf16 %v109_v15, %v108_v14  ;;  %v78_v20 = vld [vmem:[#allocation7 + $0x20] sm:$0xff]  ;;  %3935 = vmatprep.subr.bf16.mxu0 %v3934_v12  ;;  %v3938_v21 = vpack.c.bf16 %v95_v19, %v94_v18  ;;  %v79_v22 = vld [vmem:[#allocation7 + $0x28] sm:$0xff]  ;;  %v96_v26 = vld [vmem:[#allocation7 + $0xb0] sm:$0xff]  ;;  %vm2825_vm11 = vcmask 654848   ;;  %vm3302_vm12 = vcmask 786048  }
  0x3d   :  { %3965 = vmatpush3.bf16.msra.mxu1 %v3962_v8  ;;  %v110_v23 = vld [vmem:[#allocation7 + $0x120] sm:$0xff]  ;;  %v111_v24 = vld [vmem:[#allocation7 + $0x128] sm:$0xff]  ;;  %v97_v27 = vld [vmem:[#allocation7 + $0xb8] sm:$0xff]  ;;  %v3940_v30 = vpack.c.bf16 %v79_v22, %v78_v20  ;;  %v4301_v20 = vmov 96   ;;  %v4303_v22 = vmov 97   ;;  %vm3364_vm13 = vcmask 785408  }
  0x3e   :  { %3967 = vmatprep.subr.bf16.mxu1 %v3966_v17  ;;  %v3970_v25 = vpack.c.bf16 %v111_v24, %v110_v23  ;;  %v112_v28 = vld [vmem:[#allocation7 + $0x130] sm:$0xff]  ;;  %v113_v29 = vld [vmem:[#allocation7 + $0x138] sm:$0xff]  ;;  %v3942_v31 = vpack.c.bf16 %v97_v27, %v96_v26  ;;  %v98_v35 = vld [vmem:[#allocation7 + $0xc0] sm:$0xff]  ;;  %4066 = vset.pattern.permute.xlu1 %v4301_v20 }
  0x3f   :  { %3937 = vmatpush3.bf16.msra.mxu0 %v3936_v16  ;;  %v80_v32 = vld [vmem:[#allocation7 + $0x30] sm:$0xff]  ;;  %v81_v33 = vld [vmem:[#allocation7 + $0x38] sm:$0xff]  ;;  %v3974_v34 = vpack.c.bf16 %v113_v29, %v112_v28  ;;  %v99_v36 = vld [vmem:[#allocation7 + $0xc8] sm:$0xff]  ;;  %4071 = vset.pattern.permute.xlu0 %v4303_v22 }
  0x40   :  { %3939 = vmatprep.subr.bf16.mxu0 %v3938_v21  ;;  %v114_v37 = vld [vmem:[#allocation7 + $0x140] sm:$0xff]  ;;  %v115_v38 = vld [vmem:[#allocation7 + $0x148] sm:$0xff]  ;;  %v3944_v39 = vpack.c.bf16 %v81_v33, %v80_v32  ;;  %v3946_v40 = vpack.c.bf16 %v99_v36, %v98_v35  ;;  %v100_v44 = vld [vmem:[#allocation7 + $0xd0] sm:$0xff]  ;;  %v4302_v21 = vmov 0.0  }
  0x41   :  { %3969 = vmatpush3.bf16.msra.mxu1 %v3966_v17  ;;  %v82_v41 = vld [vmem:[#allocation7 + $0x40] sm:$0xff]  ;;  %v83_v42 = vld [vmem:[#allocation7 + $0x48] sm:$0xff]  ;;  %v3978_v43 = vpack.c.bf16 %v115_v38, %v114_v37  ;;  %v101_v45 = vld [vmem:[#allocation7 + $0xd8] sm:$0xff] }
  0x42   :  { %3971 = vmatprep.subr.bf16.mxu1 %v3970_v25  ;;  %v116_v46 = vld [vmem:[#allocation7 + $0x150] sm:$0xff]  ;;  %v117_v47 = vld [vmem:[#allocation7 + $0x158] sm:$0xff]  ;;  %v63_v48 = vld [vmem:[#allocation4 + $0x8] sm:$0xff]  ;;  %v3948_v49 = vpack.c.bf16 %v83_v42, %v82_v41  ;;  %v3950_v51 = vpack.c.bf16 %v101_v45, %v100_v44 }
  0x43   :  { %3941 = vmatpush3.bf16.msra.mxu0 %v3940_v30  ;;  %193 = vmatprep.mubr.f32.mxu0 %v63_v48  ;;  %v64_v50 = vld [vmem:[#allocation4 + $0x10] sm:$0xff]  ;;  %v85_v53 = vld [vmem:[#allocation7 + $0x58] sm:$0xff]  ;;  %v3982_v54 = vpack.c.bf16 %v117_v47, %v116_v46  ;;  %v102_v55 = vld [vmem:[#allocation7 + $0xe0] sm:$0xff]  ;;  %v4305_v47 = vmov 99  }
  0x44   :  { %3943 = vmatprep.subr.bf16.mxu0 %v3942_v31  ;;  %v84_v52 = vld [vmem:[#allocation7 + $0x50] sm:$0xff]  ;;  %v103_v56 = vld [vmem:[#allocation7 + $0xe8] sm:$0xff]  ;;  %3774 = vmatprep.mubr.f32.mxu1 %v64_v50  ;;  %v118_v57 = vld [vmem:[#allocation7 + $0x160] sm:$0xff]  ;;  %v4308_v50 = vmov 98  }
  0x45   :  { %3973 = vmatpush3.bf16.msra.mxu1 %v3970_v25  ;;  %v119_v58 = vld [vmem:[#allocation7 + $0x168] sm:$0xff]  ;;  %v3952_v59 = vpack.c.bf16 %v85_v53, %v84_v52  ;;  %v3954_v60 = vpack.c.bf16 %v103_v56, %v102_v55  ;;  %v86_v61 = vld [vmem:[#allocation7 + $0x60] sm:$0xff]  ;;  %v104_v0 = vld [vmem:[#allocation7 + $0xf0] sm:$0xff] }
  0x46   :  { %3975 = vmatprep.subr.bf16.mxu1 %v3974_v34  ;;  %v87_v62 = vld [vmem:[#allocation7 + $0x68] sm:$0xff]  ;;  %v3986_v63 = vpack.c.bf16 %v119_v58, %v118_v57  ;;  %v105_v1 = vld [vmem:[#allocation7 + $0xf8] sm:$0xff]  ;;  %v120_v2 = vld [vmem:[#allocation7 + $0x170] sm:$0xff] }
  0x47   :  { %3945 = vmatpush3.bf16.msra.mxu0 %v3944_v39  ;;  %v121_v3 = vld [vmem:[#allocation7 + $0x178] sm:$0xff]  ;;  %v3956_v4 = vpack.c.bf16 %v87_v62, %v86_v61  ;;  %v3958_v5 = vpack.c.bf16 %v105_v1, %v104_v0  ;;  %v88_v6 = vld [vmem:[#allocation7 + $0x70] sm:$0xff]  ;;  %v62_v10 = vld [vmem:[#allocation4] sm:$0xff] }
  0x48   :  { %3947 = vmatprep.subr.bf16.mxu0 %v3946_v40  ;;  %v89_v7 = vld [vmem:[#allocation7 + $0x78] sm:$0xff]  ;;  %v3990_v8 = vpack.c.bf16 %v121_v3, %v120_v2  ;;  %v66_v11 = vld [vmem:[#allocation4 + $0x20] sm:$0xff]  ;;  %v67_v12 = vld [vmem:[#allocation4 + $0x28] sm:$0xff] }
  0x49   :  { %3977 = vmatpush3.bf16.msra.mxu1 %v3974_v34  ;;  %v3960_v9 = vpack.c.bf16 %v89_v7, %v88_v6  ;;  %v70_v13 = vld [vmem:[#allocation4 + $0x40] sm:$0xff]  ;;  %v65_v14 = vld [vmem:[#allocation4 + $0x18] sm:$0xff]  ;;  %v68_v17 = vld [vmem:[#allocation4 + $0x30] sm:$0xff] }
  0x4a   :  { %3979 = vmatprep.subr.bf16.mxu1 %v3978_v43  ;;  %v69_v15 = vld [vmem:[#allocation4 + $0x38] sm:$0xff]  ;;  %v72_v18 = vld [vmem:[#allocation4 + $0x50] sm:$0xff]  ;;  %v71_v19 = vld [vmem:[#allocation4 + $0x48] sm:$0xff] }
  0x4b   :  { %3949 = vmatpush3.bf16.msra.mxu0 %v3948_v49  ;;  %v73_v16 = vld [vmem:[#allocation4 + $0x58] sm:$0xff]  ;;  %v3581_v26 = vld [vmem:[%s5231_s2] ss:$0 sm:$0xff]  ;;  %s4306_s2 = smov 112   ;;  %v4307_v49 = vmov 100  }
  0x4c   :  { %3951 = vmatprep.subr.bf16.mxu0 %v3950_v51 }
  0x4d   :  { %3981 = vmatpush3.bf16.msra.mxu1 %v3978_v43 }
  0x4e   :  { %3983 = vmatprep.subr.bf16.mxu1 %v3982_v54 }
  0x4f   :  { %3953 = vmatpush3.bf16.msra.mxu0 %v3952_v59 }
  0x50   :  { %3955 = vmatprep.subr.bf16.mxu0 %v3954_v60 }
  0x51   :  { %3985 = vmatpush3.bf16.msra.mxu1 %v3982_v54 }
  0x52   :  { %3987 = vmatprep.subr.bf16.mxu1 %v3986_v63 }
  0x53   :  { %3957 = vmatpush3.bf16.msra.mxu0 %v3956_v4 }
  0x54   :  { %3959 = vmatprep.subr.bf16.mxu0 %v3958_v5 }
  0x55   :  { %3989 = vmatpush3.bf16.msra.mxu1 %v3986_v63 }
  0x56   :  { %3991 = vmatprep.subr.bf16.mxu1 %v3990_v8 }
  0x57   :  { %3961 = vmatpush3.bf16.msra.mxu0 %v3960_v9 }
  0x58   :  { %3800 = vmatprep.subr.mxu0 %v4302_v21 }
  0x59   :  { %3993 = vmatpush3.bf16.msra.mxu1 %v3990_v8 }
  0x5a   :  { %194 = vmatmul.mubr.f32.vlgmr.msra.gmra.mrb[0].mxu0 %v62_v10  ;;  %3780 = vmatprep.subr.mxu1 %v4302_v21 }
  0x5b   :  { %198 = vmatprep.mubr.f32.mxu0 %v66_v11 }
  0x5c   :  { %3775 = vmatmul.mubr.f32.vlgmr.msra.gmra.mrb[0].mxu1 %v67_v12 }
  0x5d   :  { %3777 = vmatprep.mubr.f32.mxu1 %v70_v13 }
  0x5e   :  { %199 = vmatmul.mubr.f32.gmra.mrb[2].mxu0 %v65_v14 }
  0x5f   :  { %203 = vmatprep.mubr.f32.mxu0 %v69_v15 }
  0x60   :  { %3778 = vmatmul.mubr.f32.gmra.mrb[2].mxu1 %v73_v16 }
  0x61   :  { %3782 = vmatprep.mubr.msk.f32.mxu1 %vm4309_vm3, %v4302_v21 }
  0x62   :  { %204 = vmatmul.mubr.f32.gmra.mrb[4].mxu0 %v68_v17 }
  0x63   :  { %208 = vmatprep.mubr.f32.mxu0 %v72_v18 }
  0x66   :  { %209 = vmatmul.mubr.f32.gmra.mrb[6].mxu0 %v71_v19 }
  0x67   :  { %3802 = vmatprep.mubr.msk.f32.mxu0 %vm4309_vm3, %v4302_v21 }
 0x12d   :  { %v3646_v23 = vpop.f32.mrb[0].mxu0 }
 0x12e   :  { %v3647_v24 = vpop.f32.mrb[1].mxu0 }
 0x12f   :  { %v3776_v25 = vpop.f32.mrb[0].mxu1  ;;  %v3648_v27 = vadd.f32 %v3647_v24, %v3646_v23 }
 0x130   :  { %v280_v28 = vpop.f32.mrb[1].mxu1 }
 0x131   :  { %v3649_v29 = vpop.f32.mrb[2].mxu0  ;;  %v196_v30 = vadd.f32 %v3648_v27, %v3581_v26 }
 0x132   :  { %v3650_v31 = vpop.f32.mrb[3].mxu0 }
 0x133   :  { %v3779_v32 = vpop.f32.mrb[2].mxu1  ;;  %v4397_v33 = vadd.f32 %v280_v28, %v196_v30  ;;  %v3651_v34 = vadd.f32 %v3650_v31, %v3649_v29 }
 0x134   :  { %v290_v35 = vpop.f32.mrb[3].mxu1 }
 0x135   :  { %v201_v36 = vadd.f32 %v3651_v34, %v3581_v26  ;;  %525 = vperm.xlu1 %4066, %v4397_v33   ;;  %311 = vrot.lane.b32.xlu0 %v4397_v33, %s4304_s7  ;;  %v3652_v37 = vpop.f32.mrb[4].mxu0  ;;  %vm476_vm1 = vcmp.ge.f32.partialorder %v4397_v33, 0.0 }
 0x136   :  { %3781 = vmatpush3.msra.mxu1 %v4397_v33  ;;  %v3653_v38 = vpop.f32.mrb[5].mxu0 }
 0x137   :  { %v4403_v39 = vadd.f32 %v3776_v25, %v201_v36  ;;  %v3654_v40 = vadd.f32 %v3653_v38, %v3652_v37  ;;  %3785 = vmatprep.subr.mxu1 %v4302_v21  ;;  %v480_v25 = vlaneseq }
 0x139   :  { %4067 = vset.pattern.permute.xlu1 %v4303_v22  ;;  %313 = vrot.lane.b32.xlu0 %v4403_v39, %s4304_s7  ;;  %v3655_v41 = vpop.f32.mrb[6].mxu0  ;;  %v206_v42 = vadd.f32 %v3654_v40, %v3581_v26  ;;  %vm477_vm2 = vcmp.ge.f32.partialorder %v4403_v39, 0.0 }
 0x13a   :  { %967 = vperm.xlu1 %4067, %v4397_v33   ;;  %v3656_v43 = vpop.f32.mrb[7].mxu0 }
 0x13b   :  { %v3657_v44 = vadd.f32 %v3656_v43, %v3655_v41  ;;  %v4410_v45 = vadd.f32 %v290_v35, %v206_v42 }
 0x13d   :  { %971 = vperm.xlu0 %4071, %v4403_v39   ;;  %v211_v46 = vadd.f32 %v3657_v44, %v3581_v26  ;;  %v481_v26 = vshrl.u32 %v480_v25, 7  ;;  %vm478_vm4 = vcmp.ge.f32.partialorder %v4410_v45, 0.0 }
 0x13e   :  { %4068 = vset.pattern.permute.xlu1 %v4305_v47 }
 0x13f   :  { %1921 = vperm.xlu1 %4068, %v4397_v33   ;;  %v4415_v48 = vadd.f32 %v3779_v32, %v211_v46  ;;  %v4512_v27 = vsub.s32 1, %v481_v26  ;;  %v4514_v28 = vsub.s32 0, %v481_v26  ;;  %v4516_v31 = vsub.s32 2, %v481_v26 }
 0x141   :  { %4072 = vset.pattern.permute.xlu0 %v4305_v47  ;;  %vm479_vm5 = vcmp.ge.f32.partialorder %v4415_v48, 0.0 }
 0x142   :  { %1925 = vperm.xlu0 %4072, %v4403_v39  }
 0x143   :  { %1067 = vrot.lane.b32.xlu1 %v4397_v33, %s4306_s2 }
 0x144   :  { %4069 = vset.pattern.permute.xlu1 %v4307_v49 }
 0x146   :  { %1144 = vrot.lane.b32.xlu0 %v4403_v39, %s4306_s2 }
 0x147   :  { %2398 = vperm.xlu1 %4069, %v4397_v33   ;;  %4073 = vset.pattern.permute.xlu0 %v4307_v49 }
 0x14a   :  { %2402 = vperm.xlu0 %4073, %v4403_v39  }
 0x14b   :  { %4070 = vset.pattern.permute.xlu1 %v4301_v20 }
 0x14c   :  { %529 = vperm.xlu1 %4070, %v4403_v39  }
 0x14e   :  { %4080 = vset.pattern.permute.xlu0 %v4305_v47 }
 0x14f   :  { %1933 = vperm.xlu0 %4080, %v4415_v48  }
 0x150   :  { %315 = vrot.lane.b32.xlu1 %v4410_v45, %s4304_s7 }
 0x154   :  { %533 = vperm.xlu1 %4070, %v4410_v45  }
 0x158   :  { %4074 = vset.pattern.permute.xlu1 %v4303_v22 }
 0x159   :  { %975 = vperm.xlu1 %4074, %v4410_v45  }
 0x15d   :  { %4075 = vset.pattern.permute.xlu1 %v4308_v50 }
 0x15e   :  { %1452 = vperm.xlu1 %4075, %v4410_v45  }
 0x162   :  { %4076 = vset.pattern.permute.xlu1 %v4305_v47 }
 0x163   :  { %1929 = vperm.xlu1 %4076, %v4410_v45  }
 0x167   :  { %1221 = vrot.lane.b32.xlu1 %v4410_v45, %s4306_s2 }
 0x168   :  { %4077 = vset.pattern.permute.xlu1 %v4307_v49 }
 0x16b   :  { %2406 = vperm.xlu1 %4077, %v4410_v45  }
 0x16f   :  { %317 = vrot.lane.b32.xlu1 %v4415_v48, %s4304_s7 }
 0x170   :  { %4078 = vset.pattern.permute.xlu1 %v4301_v20 }
 0x173   :  { %537 = vperm.xlu1 %4078, %v4415_v48  }
 0x177   :  { %4079 = vset.pattern.permute.xlu1 %v4303_v22 }
 0x178   :  { %979 = vperm.xlu1 %4079, %v4415_v48  }
 0x1a7   :  { %v312_v51 = vpop.permute.xlu0 %311 }
 0x1a8   :  { %323 = vxpose.xlu0.b32.start.end [1/1] (short) (narrow) %v312_v51, 8  ;;  %v4533_v51 = vsub.s32 3, %v481_v26 }
 0x1ab   :  { %v314_v52 = vpop.permute.xlu0 %313 }
 0x1ac   :  { %355 = vxpose.xlu1.b32.start.end [1/1] (short) (narrow) %v314_v52, 8 }
 0x1b4   :  { %v4450_v53 = vpop.permute.xlu1 %525 }
 0x1b9   :  { %v4452_v54 = vpop.permute.xlu1 %967 }
 0x1bc   :  { %v4473_v3 = vpop.permute.xlu0 %971 }
 0x1be   :  { %v4454_v55 = vpop.permute.xlu1 %1921 }
 0x1c1   :  { %v4475_v4 = vpop.permute.xlu0 %1925 }
 0x1c2   :  { %v1068_v56 = vpop.permute.xlu1 %1067 }
 0x1c3   :  { %3801 = vmatpush3.msra.mxu0 %v1068_v56 }
 0x1c4   :  { %3810 = vmatprep.subr.mxu0 %v4302_v21 }
 0x1c5   :  { %v4477_v5 = vpop.permute.xlu0 %1144 }
 0x1c6   :  { %v4457_v57 = vpop.permute.xlu1 %2398 }
 0x1c9   :  { %v4480_v6 = vpop.permute.xlu0 %2402 }
 0x1cb   :  { %v4459_v58 = vpop.permute.xlu1 %529 }
 0x1ce   :  { %v4484_v8 = vpop.permute.xlu0 %1933 }
 0x1cf   :  { %v316_v59 = vpop.permute.xlu1 %315 }
 0x1d0   :  { %387 = vxpose.xlu0.b32.start.end [1/1] (short) (narrow) %v316_v59, 8 }
 0x1d3   :  { %v4461_v60 = vpop.permute.xlu1 %533 }
 0x1d8   :  { %v4463_v61 = vpop.permute.xlu1 %975 }
 0x1dd   :  { %v4465_v62 = vpop.permute.xlu1 %1452 }
 0x1e2   :  { %v4467_v63 = vpop.permute.xlu1 %1929 }
 0x1e6   :  { %v4469_v0 = vpop.permute.xlu1 %1221 }
 0x1ea   :  { %v4471_v1 = vpop.permute.xlu1 %2406 }
 0x1ee   :  { %v318_v2 = vpop.permute.xlu1 %317 }
 0x1ef   :  { %419 = vxpose.xlu0.b32.start.end [1/1] (short) (narrow) %v318_v2, 8 }
 0x1f2   :  { %v4482_v7 = vpop.permute.xlu1 %537 }
 0x1f7   :  { %v4486_v9 = vpop.permute.xlu1 %979 }
 0x218   :  { %4081 = vset.pattern.permute.xlu0 %v4301_v20 }
 0x228   :  { %v4488_v10 = vpop.trf.xlu0 }
 0x229   :  { %v464_v11 = vsel %vm451_vm0, %v4488_v10, inf  ;;  %v452_v12 = vsel %vm451_vm0, %v4488_v10, -inf }
 0x22a   :  { %465 = vmin.xlane.f32.xlu1 %v464_v11  ;;  %453 = vmax.xlane.f32.xlu0 %v452_v12 }
 0x22c   :  { %v4494_v13 = vpop.trf.xlu1 }
 0x22d   :  { %v455_v14 = vsel %vm451_vm0, %v4494_v13, -inf  ;;  %v467_v15 = vsel %vm451_vm0, %v4494_v13, inf }
 0x22e   :  { %456 = vmax.xlane.f32.xlu1 %v455_v14  ;;  %468 = vmin.xlane.f32.xlu0 %v467_v15  ;;  %v4544_v14 = vsub.s32 4, %v481_v26 }
 0x250   :  { %v4500_v16 = vpop.trf.xlu0 }
 0x251   :  { %v470_v17 = vsel %vm451_vm0, %v4500_v16, inf  ;;  %v458_v18 = vsel %vm451_vm0, %v4500_v16, -inf }
 0x252   :  { %471 = vmin.xlane.f32.xlu0 %v470_v17  ;;  %459 = vmax.xlane.f32.xlu1 %v458_v18 }
 0x26f   :  { %v4506_v19 = vpop.trf.xlu0 }
 0x270   :  { %v473_v23 = vsel %vm451_vm0, %v4506_v19, inf  ;;  %v461_v24 = vsel %vm451_vm0, %v4506_v19, -inf }
 0x271   :  { %474 = vmin.xlane.f32.xlu0 %v473_v23  ;;  %462 = vmax.xlane.f32.xlu1 %v461_v24  ;;  %v4551_v23 = vsub.s32 5, %v481_v26 }
 0x2b7   :  { %v466_v29 = vpop.xlane.xlu1 %465  ;;  %v454_v30 = vpop.xlane.xlu0 %453 }
 0x2b8   :  { %v925_v32 = vrot.slane %v454_v30, %v4512_v27  ;;  %v945_v34 = vrot.slane %v466_v29, %v4512_v27  ;;  %v483_v35 = vrot.slane %v454_v30, %v4514_v28  ;;  %v503_v36 = vrot.slane %v466_v29, %v4514_v28 }
 0x2b9   :  { %v1402_v37 = vrot.slane %v454_v30, %v4516_v31  ;;  %v1422_v38 = vrot.slane %v466_v29, %v4516_v31  ;;  %v1879_v59 = vrot.slane %v454_v30, %v4533_v51  ;;  %v1899_v2 = vrot.slane %v466_v29, %v4533_v51 }
 0x2ba   :  { %v938_v40 = vmul.f32 %v925_v32, %v4397_v33  ;;  %v958_v41 = vmul.f32 %v945_v34, %v4397_v33  ;;  %v496_v42 = vmul.f32 %v483_v35, %v4397_v33  ;;  %v516_v43 = vmul.f32 %v503_v36, %v4397_v33 }
 0x2bb   :  { %v1415_v52 = vmul.f32 %v1402_v37, %v4397_v33  ;;  %v1435_v56 = vmul.f32 %v1422_v38, %v4397_v33  ;;  %v4539_v11 = vpop.xlane.xlu1 %456  ;;  %v4546_v15 = vpop.xlane.xlu0 %468  ;;  %v1892_v17 = vmul.f32 %v1879_v59, %v4397_v33  ;;  %v1912_v18 = vmul.f32 %v1899_v2, %v4397_v33 }
 0x2bc   :  { %v962_v44 = vsel %vm476_vm1, %v938_v40, %v958_v41  ;;  %v520_v46 = vsel %vm476_vm1, %v496_v42, %v516_v43  ;;  %v2356_v24 = vrot.slane %v454_v30, %v4544_v14  ;;  %v2376_v25 = vrot.slane %v466_v29, %v4544_v14 }
 0x2bd   :  { %1004 = vperm.xlu1 %4079, %v962_v44   ;;  %562 = vperm.xlu0 %4081, %v520_v46   ;;  %v1439_v12 = vsel %vm476_vm1, %v1415_v52, %v1435_v56  ;;  %v2833_v32 = vrot.slane %v454_v30, %v4551_v23  ;;  %v2853_v34 = vrot.slane %v466_v29, %v4551_v23 }
 0x2be   :  { %v2837_v35 = vrot.slane %v4539_v11, %v4551_v23  ;;  %v2857_v36 = vrot.slane %v4546_v15, %v4551_v23  ;;  %v1916_v26 = vsel %vm476_vm1, %v1892_v17, %v1912_v18  ;;  %v2369_v29 = vmul.f32 %v2356_v24, %v4397_v33 }
 0x2bf   :  { %v2846_v37 = vmul.f32 %v2833_v32, %v4397_v33  ;;  %v2866_v38 = vmul.f32 %v2853_v34, %v4397_v33  ;;  %v2389_v30 = vmul.f32 %v2376_v25, %v4397_v33  ;;  %v487_v42 = vrot.slane %v4539_v11, %v4514_v28 }
 0x2c0   :  { %v2847_v40 = vmul.f32 %v2837_v35, %v4403_v39  ;;  %v2867_v41 = vmul.f32 %v2857_v36, %v4403_v39  ;;  %v507_v43 = vrot.slane %v4546_v15, %v4514_v28  ;;  %v929_v2 = vrot.slane %v4539_v11, %v4512_v27 }
 0x2c1   :  { %4082 = vset.pattern.permute.xlu1 %v4308_v50  ;;  %4090 = vset.pattern.permute.xlu0 %v4303_v22  ;;  %v4577_v44 = vsel %vm476_vm1, %v2846_v37, %v2866_v38  ;;  %v2393_v52 = vsel %vm476_vm1, %v2369_v29, %v2389_v30  ;;  %v497_v56 = vmul.f32 %v487_v42, %v4403_v39 }
 0x2c2   :  { %1481 = vperm.xlu1 %4082, %v1439_v12   ;;  %v4581_v46 = vsel %vm477_vm2, %v2847_v40, %v2867_v41  ;;  %v517_v59 = vmul.f32 %v507_v43, %v4403_v39  ;;  %v949_v12 = vrot.slane %v4546_v15, %v4512_v27  ;;  %v939_v18 = vmul.f32 %v929_v2, %v4403_v39 }
 0x2c3   :  { %v1883_v25 = vrot.slane %v4539_v11, %v4533_v51  ;;  %v1903_v32 = vrot.slane %v4546_v15, %v4533_v51  ;;  %v2380_v37 = vrot.slane %v4546_v15, %v4544_v14 }
 0x2c4   :  { %v521_v17 = vsel %vm477_vm2, %v497_v56, %v517_v59  ;;  %v959_v24 = vmul.f32 %v949_v12, %v4403_v39 }
 0x2c5   :  { %v1893_v35 = vmul.f32 %v1883_v25, %v4403_v39  ;;  %v1913_v36 = vmul.f32 %v1903_v32, %v4403_v39  ;;  %v2390_v29 = vmul.f32 %v2380_v37, %v4403_v39 }
 0x2c6   :  { %4083 = vset.pattern.permute.xlu1 %v4305_v47  ;;  %v963_v34 = vsel %vm477_vm2, %v939_v18, %v959_v24 }
 0x2c7   :  { %1958 = vperm.xlu1 %4083, %v1916_v26   ;;  %v2360_v26 = vrot.slane %v4539_v11, %v4544_v14  ;;  %v1917_v38 = vsel %vm477_vm2, %v1893_v35, %v1913_v36 }
 0x2c9   :  { %v2370_v40 = vmul.f32 %v2360_v26, %v4403_v39 }
 0x2cb   :  { %4084 = vset.pattern.permute.xlu1 %v4307_v49  ;;  %v2394_v42 = vsel %vm477_vm2, %v2370_v40, %v2390_v29 }
 0x2cc   :  { %2435 = vperm.xlu1 %4084, %v2393_v52  }
 0x2d0   :  { %4085 = vset.pattern.permute.xlu1 %v4301_v20 }
 0x2d1   :  { %567 = vperm.xlu1 %4085, %v521_v17  }
 0x2d5   :  { %4086 = vset.pattern.permute.xlu1 %v4303_v22 }
 0x2d6   :  { %1009 = vperm.xlu1 %4086, %v963_v34  }
 0x2da   :  { %4087 = vset.pattern.permute.xlu1 %v4305_v47 }
 0x2db   :  { %1963 = vperm.xlu1 %4087, %v1917_v38  }
 0x2df   :  { %v460_v30 = vpop.xlane.xlu1 %459  ;;  %v472_v41 = vpop.xlane.xlu0 %471  ;;  %4088 = vset.pattern.permute.xlu1 %v4307_v49 }
 0x2e0   :  { %2440 = vperm.xlu1 %4088, %v2394_v42   ;;  %v491_v43 = vrot.slane %v460_v30, %v4514_v28  ;;  %v511_v52 = vrot.slane %v472_v41, %v4514_v28  ;;  %v933_v56 = vrot.slane %v460_v30, %v4512_v27  ;;  %v953_v59 = vrot.slane %v472_v41, %v4512_v27 }
 0x2e1   :  { %v1410_v2 = vrot.slane %v460_v30, %v4516_v31  ;;  %v1430_v12 = vrot.slane %v472_v41, %v4516_v31  ;;  %v1887_v17 = vrot.slane %v460_v30, %v4533_v51  ;;  %v1907_v18 = vrot.slane %v472_v41, %v4533_v51 }
 0x2e2   :  { %v498_v24 = vmul.f32 %v491_v43, %v4410_v45  ;;  %v518_v25 = vmul.f32 %v511_v52, %v4410_v45  ;;  %v940_v32 = vmul.f32 %v933_v56, %v4410_v45  ;;  %v960_v34 = vmul.f32 %v953_v59, %v4410_v45 }
 0x2e3   :  { %v1417_v26 = vmul.f32 %v1410_v2, %v4410_v45  ;;  %v1437_v37 = vmul.f32 %v1430_v12, %v4410_v45  ;;  %v1894_v38 = vmul.f32 %v1887_v17, %v4410_v45  ;;  %v1914_v40 = vmul.f32 %v1907_v18, %v4410_v45 }
 0x2e4   :  { %4089 = vset.pattern.permute.xlu1 %v4301_v20  ;;  %v522_v35 = vsel %vm478_vm4, %v498_v24, %v518_v25  ;;  %v964_v36 = vsel %vm478_vm4, %v940_v32, %v960_v34  ;;  %v2841_v29 = vrot.slane %v460_v30, %v4551_v23  ;;  %v2364_v42 = vrot.slane %v460_v30, %v4544_v14 }
 0x2e5   :  { %572 = vperm.xlu1 %4089, %v522_v35   ;;  %1014 = vperm.xlu0 %4090, %v964_v36   ;;  %v2384_v43 = vrot.slane %v472_v41, %v4544_v14  ;;  %v2861_v52 = vrot.slane %v472_v41, %v4551_v23  ;;  %v1441_v2 = vsel %vm478_vm4, %v1417_v26, %v1437_v37  ;;  %v4311_v24 = vmov 101  }
 0x2e6   :  { %v2848_v56 = vmul.f32 %v2841_v29, %v4410_v45  ;;  %v1918_v12 = vsel %vm478_vm4, %v1894_v38, %v1914_v40  ;;  %v2371_v30 = vmul.f32 %v2364_v42, %v4410_v45  ;;  %v1406_v26 = vrot.slane %v4539_v11, %v4516_v31 }
 0x2e7   :  { %v2868_v59 = vmul.f32 %v2861_v52, %v4410_v45  ;;  %v2391_v41 = vmul.f32 %v2384_v43, %v4410_v45  ;;  %v1426_v29 = vrot.slane %v4546_v15, %v4516_v31 }
 0x2e9   :  { %4091 = vset.pattern.permute.xlu1 %v4308_v50  ;;  %4092 = vset.pattern.permute.xlu0 %v4305_v47  ;;  %v4660_v17 = vsel %vm478_vm4, %v2848_v56, %v2868_v59  ;;  %v2395_v18 = vsel %vm478_vm4, %v2371_v30, %v2391_v41  ;;  %v1436_v43 = vmul.f32 %v1426_v29, %v4403_v39 }
 0x2ea   :  { %1491 = vperm.xlu1 %4091, %v1441_v2   ;;  %1968 = vperm.xlu0 %4092, %v1918_v12  }
 0x2ee   :  { %4093 = vset.pattern.permute.xlu0 %v4307_v49  ;;  %4094 = vset.pattern.permute.xlu1 %v4301_v20 }
 0x2ef   :  { %2445 = vperm.xlu0 %4093, %v2395_v18  }
 0x2f3   :  { %1544 = vrot.lane.b32.xlu0 %v4397_v33, %s4310_s8 }
 0x2f4   :  { %4097 = vset.pattern.permute.xlu0 %v4311_v24 }
 0x2f7   :  { %2875 = vperm.xlu0 %4097, %v4397_v33  }
 0x2fb   :  { %1621 = vrot.lane.b32.xlu0 %v4403_v39, %s4310_s8 }
 0x2fe   :  { %v4672_v25 = vpop.xlane.xlu1 %462  ;;  %v4674_v32 = vpop.xlane.xlu0 %474 }
 0x2ff   :  { %2879 = vperm.xlu0 %4097, %v4403_v39   ;;  %v495_v20 = vrot.slane %v4672_v25, %v4514_v28  ;;  %v515_v34 = vrot.slane %v4674_v32, %v4514_v28  ;;  %v937_v38 = vrot.slane %v4672_v25, %v4512_v27  ;;  %v957_v40 = vrot.slane %v4674_v32, %v4512_v27 }
 0x300   :  { %v1414_v56 = vrot.slane %v4672_v25, %v4516_v31  ;;  %v1434_v59 = vrot.slane %v4674_v32, %v4516_v31  ;;  %v1891_v12 = vrot.slane %v4672_v25, %v4533_v51  ;;  %v1911_v30 = vrot.slane %v4674_v32, %v4533_v51 }
 0x301   :  { %v499_v35 = vmul.f32 %v495_v20, %v4415_v48  ;;  %v519_v36 = vmul.f32 %v515_v34, %v4415_v48  ;;  %v941_v42 = vmul.f32 %v937_v38, %v4415_v48  ;;  %v961_v11 = vmul.f32 %v957_v40, %v4415_v48 }
 0x302   :  { %v1438_v2 = vmul.f32 %v1434_v59, %v4415_v48  ;;  %v1895_v18 = vmul.f32 %v1891_v12, %v4415_v48  ;;  %v1915_v20 = vmul.f32 %v1911_v30, %v4415_v48  ;;  %v547_v59 = vrot.slane %v4494_v13, %v4514_v28 }
 0x303   :  { %4099 = vset.pattern.permute.xlu0 %v4308_v50  ;;  %v523_v37 = vsel %vm479_vm5, %v499_v35, %v519_v36  ;;  %v1416_v50 = vmul.f32 %v1406_v26, %v4403_v39  ;;  %v965_v15 = vsel %vm479_vm5, %v941_v42, %v961_v11  ;;  %v2388_v35 = vrot.slane %v4674_v32, %v4544_v14 }
 0x304   :  { %577 = vperm.xlu1 %4094, %v523_v37   ;;  %1444 = vperm.xlu0 %4099, %v4397_v33   ;;  %v1919_v34 = vsel %vm479_vm5, %v1895_v18, %v1915_v20  ;;  %v2865_v37 = vrot.slane %v4674_v32, %v4551_v23 }
 0x305   :  { %v1440_v52 = vsel %vm477_vm2, %v1416_v50, %v1436_v43  ;;  %v2392_v26 = vmul.f32 %v2388_v35, %v4415_v48  ;;  %v551_v35 = vrot.slane %v4500_v16, %v4514_v28 }
 0x306   :  { %v2869_v38 = vmul.f32 %v2865_v37, %v4415_v48 }
 0x308   :  { %1298 = vrot.lane.b32.xlu1 %v4415_v48, %s4306_s2  ;;  %1448 = vperm.xlu0 %4099, %v4403_v39  }
 0x309   :  { %4095 = vset.pattern.permute.xlu1 %v4303_v22  ;;  %v1418_v22 = vmul.f32 %v1414_v56, %v4415_v48 }
 0x30b   :  { %v1442_v41 = vsel %vm479_vm5, %v1418_v22, %v1438_v2  ;;  %v557_v2 = vmul.f32 %v547_v59, %v4459_v58  ;;  %v1470_v59 = vrot.slane %v4500_v16, %v4516_v31 }
 0x30c   :  { %1019 = vperm.xlu1 %4095, %v965_v15   ;;  %1486 = vperm.xlu0 %4099, %v1440_v52  }
 0x310   :  { %4096 = vset.pattern.permute.xlu1 %v4307_v49  ;;  %1456 = vperm.xlu0 %4099, %v4415_v48  }
 0x311   :  { %2410 = vperm.xlu1 %4096, %v4415_v48  }
 0x314   :  { %1775 = vrot.lane.b32.xlu0 %v4415_v48, %s4310_s8 }
 0x315   :  { %4098 = vset.pattern.permute.xlu1 %v4311_v24 }
 0x316   :  { %2912 = vperm.xlu1 %4098, %v4577_v44   ;;  %v2368_v44 = vrot.slane %v4672_v25, %v4544_v14 }
 0x318   :  { %1496 = vperm.xlu0 %4099, %v1442_v41   ;;  %v2372_v36 = vmul.f32 %v2368_v44, %v4415_v48 }
 0x31a   :  { %1698 = vrot.lane.b32.xlu1 %v4410_v45, %s4310_s8 }
 0x31c   :  { %4100 = vset.pattern.permute.xlu0 %v4305_v47  ;;  %v2396_v47 = vsel %vm479_vm5, %v2372_v36, %v2392_v26  ;;  %v993_v36 = vrot.slane %v4500_v16, %v4512_v27 }
 0x31d   :  { %1973 = vperm.xlu0 %4100, %v1919_v34  }
 0x31e   :  { %2917 = vperm.xlu1 %4098, %v4581_v46   ;;  %v2845_v46 = vrot.slane %v4672_v25, %v4551_v23  ;;  %v543_v25 = vrot.slane %v4488_v10, %v4514_v28  ;;  %v1000_v26 = vmul.f32 %v993_v36, %v4463_v61 }
 0x320   :  { %v556_v40 = vmul.f32 %v543_v25, %v4450_v53 }
 0x321   :  { %4101 = vset.pattern.permute.xlu0 %v4311_v24 }
 0x322   :  { %2021 = vrot.lane.b32.xlu1 %v4397_v33, %s4312_s9  ;;  %2883 = vperm.xlu0 %4101, %v4410_v45  }
 0x323   :  { %4102 = vset.pattern.permute.xlu1 %v4307_v49  ;;  %v2849_v49 = vmul.f32 %v2845_v46, %v4415_v48 }
 0x326   :  { %2450 = vperm.xlu1 %4102, %v2396_v47   ;;  %2098 = vrot.lane.b32.xlu0 %v4403_v39, %s4312_s9 }
 0x32a   :  { %4103 = vset.pattern.permute.xlu1 %v4311_v24  ;;  %2887 = vperm.xlu0 %4101, %v4415_v48   ;;  %v2873_v24 = vsel %vm479_vm5, %v2849_v49, %v2869_v38 }
 0x32b   :  { %2922 = vperm.xlu1 %4103, %v4660_v17   ;;  %v985_v17 = vrot.slane %v4488_v10, %v4512_v27 }
 0x32d   :  { %v998_v32 = vmul.f32 %v985_v17, %v4452_v54 }
 0x32e   :  { %2252 = vrot.lane.b32.xlu0 %v4415_v48, %s4312_s9 }
 0x32f   :  { %2175 = vrot.lane.b32.xlu1 %v4410_v45, %s4312_s9 }
 0x332   :  { %2575 = vrot.lane.b32.xlu0 %v4403_v39, %s4313_s10 }
 0x333   :  { %2927 = vperm.xlu1 %4103, %v2873_v24  }
 0x336   :  { %2729 = vrot.lane.b32.xlu0 %v4415_v48, %s4313_s10 }
 0x337   :  { %2498 = vrot.lane.b32.xlu1 %v4397_v33, %s4313_s10 }
 0x33a   :  { %3052 = vrot.lane.b32.xlu0 %v4403_v39, %s4314_s11 }
 0x33b   :  { %2652 = vrot.lane.b32.xlu1 %v4410_v45, %s4313_s10 }
 0x33c   :  { %v1005_v29 = vpop.permute.xlu1 %1004  ;;  %v563_v42 = vpop.permute.xlu0 %562 }
 0x33d   :  { %v1022_v11 = vsub.f32 %v998_v32, %v1005_v29  ;;  %v580_v50 = vsub.f32 %v556_v40, %v563_v42 }
 0x33e   :  { %3206 = vrot.lane.b32.xlu0 %v4415_v48, %s4314_s11 }
 0x33f   :  { %v1026_v43 = vmul.f32 1.442695, %v1022_v11  ;;  %v584_v15 = vmul.f32 1.442695, %v580_v50  ;;  %2975 = vrot.lane.b32.xlu1 %v4397_v33, %s4314_s11  ;;  %v2416_v33 = vrot.slane %v4488_v10, %v4544_v14  ;;  %v989_v50 = vrot.slane %v4494_v13, %v4512_v27 }
 0x341   :  { %4104 = vpow2.f32 %v1026_v43  ;;  %v4785_v52 = vpop.permute.xlu1 %1481 }
 0x342   :  { %4106 = vpow2.f32 %v584_v15  ;;  %v555_v15 = vrot.slane %v4506_v19, %v4514_v28 }
 0x343   :  { %3129 = vrot.lane.b32.xlu1 %v4410_v45, %s4314_s11 }
 0x346   :  { %v4789_v53 = vpop.permute.xlu1 %1958 }
 0x34b   :  { %v4105_v54 = vpop.eup %4104  ;;  %v2436_v56 = vpop.permute.xlu1 %2435 }
 0x34c   :  { %v4793_v22 = vpop.eup %4106  ;;  %3803 = vmatmul.mubr.msk.f32.vlgmr.msra.gmra.mrb[8].mxu0 %vm592_vm6, %v4105_v54  ;;  %v1034_v38 = vsel %vm592_vm6, %v4105_v54, 0.0 }
 0x34d   :  { %3783 = vmatmul.mubr.msk.f32.vlgmr.msra.gmra.mrb[4].mxu1 %vm592_vm6, %v4793_v22  ;;  %3811 = vmatpush3.msra.mxu0 %v4469_v0  ;;  %v2429_v0 = vmul.f32 %v2416_v33, %v4457_v57  ;;  %v558_v57 = vmul.f32 %v551_v35, %v4461_v60  ;;  %v999_v33 = vmul.f32 %v989_v50, %v4473_v3 }
 0x34e   :  { %3786 = vmatpush3.msra.mxu1 %v4403_v39  ;;  %3787 = vmatprep.mubr.msk.f32.mxu1 %vm4309_vm3, %v4302_v21  ;;  %v997_v3 = vrot.slane %v4506_v19, %v4512_v27 }
 0x34f   :  { %3790 = vmatprep.subr.mxu1 %v4302_v21  ;;  %3812 = vmatprep.mubr.msk.f32.mxu0 %vm4309_vm3, %v4302_v21  ;;  %v2453_v41 = vsub.f32 %v2429_v0, %v2436_v56 }
 0x350   :  { %v568_v12 = vpop.permute.xlu1 %567  ;;  %3820 = vmatprep.subr.mxu0 %v4302_v21 }
 0x351   :  { %v581_v30 = vsub.f32 %v557_v2, %v568_v12  ;;  %v2457_v20 = vmul.f32 1.442695, %v2453_v41  ;;  %v559_v2 = vmul.f32 %v555_v15, %v4482_v7  ;;  %v1462_v12 = vrot.slane %v4488_v10, %v4516_v31 }
 0x353   :  { %v586_v39 = vmul.f32 1.442695, %v581_v30 }
 0x355   :  { %4108 = vpow2.f32 %v586_v39  ;;  %v4810_v18 = vpop.permute.xlu1 %1009 }
 0x356   :  { %4110 = vpow2.f32 %v2457_v20  ;;  %v1023_v41 = vsub.f32 %v999_v33, %v4810_v18  ;;  %v1466_v18 = vrot.slane %v4494_v13, %v4516_v31 }
 0x35a   :  { %v4812_v34 = vpop.permute.xlu1 %1963 }
 0x35f   :  { %v4814_v58 = vpop.eup %4108  ;;  %v4816_v44 = vpop.permute.xlu1 %2440 }
 0x360   :  { %3788 = vmatmul.mubr.msk.f32.vlgmr.msra.gmra.mrb[6].mxu1 %vm592_vm6, %v4814_v58  ;;  %v4831_v24 = vpop.eup %4110 }
 0x361   :  { %3791 = vmatpush3.msra.mxu1 %v4410_v45  ;;  %3792 = vmatprep.mubr.msk.f32.mxu1 %vm4309_vm3, %v4302_v21  ;;  %v2465_v60 = vsel %vm592_vm6, %v4831_v24, 0.0 }
 0x362   :  { %3795 = vmatprep.subr.mxu1 %v4302_v21 }
 0x364   :  { %v573_v47 = vpop.permute.xlu1 %572  ;;  %v1015_v46 = vpop.permute.xlu0 %1014 }
 0x365   :  { %v582_v37 = vsub.f32 %v558_v57, %v573_v47  ;;  %v1024_v49 = vsub.f32 %v1000_v26, %v1015_v46 }
 0x367   :  { %v588_v17 = vmul.f32 1.442695, %v582_v37  ;;  %v1030_v25 = vmul.f32 1.442695, %v1024_v49  ;;  %1035 = vadd.xlane.f32.xlu1 %v1034_v38  ;;  %v1028_v37 = vmul.f32 1.442695, %v1023_v41  ;;  %v2420_v49 = vrot.slane %v4494_v13, %v4544_v14 }
 0x368   :  { %v1474_v41 = vrot.slane %v4506_v19, %v4516_v31 }
 0x369   :  { %4112 = vpow2.f32 %v588_v17  ;;  %v4833_v45 = vpop.permute.xlu0 %1968  ;;  %v1492_v54 = vpop.permute.xlu1 %1491  ;;  %v2430_v50 = vmul.f32 %v2420_v49, %v4480_v6 }
 0x36a   :  { %4114 = vpow2.f32 %v1030_v25 }
 0x36b   :  { %2466 = vadd.xlane.f32.xlu1 %v2465_v60 }
 0x36e   :  { %v4837_v61 = vpop.permute.xlu0 %2445 }
 0x372   :  { %v1545_v32 = vpop.permute.xlu0 %1544 }
 0x373   :  { %v4839_v40 = vpop.eup %4112 }
 0x374   :  { %v4841_v29 = vpop.eup %4114  ;;  %3793 = vmatmul.mubr.msk.f32.vlgmr.msra.gmra.mrb[8].mxu1 %vm592_vm6, %v4839_v40 }
 0x375   :  { %3796 = vmatpush3.msra.mxu1 %v4415_v48  ;;  %3813 = vmatmul.mubr.msk.f32.vlgmr.msra.gmra.mrb[10].mxu0 %vm592_vm6, %v4841_v29  ;;  %v1939_v48 = vrot.slane %v4488_v10, %v4533_v51 }
 0x376   :  { %3821 = vmatpush3.msra.mxu0 %v1545_v32  ;;  %v2876_v42 = vpop.permute.xlu0 %2875  ;;  %3797 = vmatprep.mubr.msk.f32.mxu1 %vm4309_vm3, %v4302_v21 }
 0x377   :  { %3805 = vmatprep.subr.mxu1 %v4302_v21  ;;  %3822 = vmatprep.mubr.msk.f32.mxu0 %vm4309_vm3, %v4302_v21  ;;  %v1952_v56 = vmul.f32 %v1939_v48, %v4454_v55  ;;  %v1477_v55 = vmul.f32 %v1470_v59, %v4465_v62  ;;  %v1943_v48 = vrot.slane %v4494_v13, %v4533_v51 }
 0x378   :  { %3830 = vmatprep.subr.mxu0 %v4302_v21 }
 0x379   :  { %v1976_v30 = vsub.f32 %v1952_v56, %v4789_v53  ;;  %v1501_v26 = vsub.f32 %v1477_v55, %v1492_v54  ;;  %v2454_v56 = vsub.f32 %v2430_v50, %v4816_v44  ;;  %v1953_v33 = vmul.f32 %v1943_v48, %v4475_v4 }
 0x37a   :  { %v4854_v11 = vpop.permute.xlu0 %1621 }
 0x37b   :  { %v1980_v7 = vmul.f32 1.442695, %v1976_v30  ;;  %v1507_v38 = vmul.f32 1.442695, %v1501_v26  ;;  %v1977_v30 = vsub.f32 %v1953_v33, %v4812_v34  ;;  %v2459_v44 = vmul.f32 1.442695, %v2454_v56 }
 0x37c   :  { %v2428_v56 = vrot.slane %v4506_v19, %v4544_v14 }
 0x37e   :  { %v4860_v43 = vpop.permute.xlu0 %2879 }
 0x383   :  { %v578_v0 = vpop.permute.xlu1 %577  ;;  %v1445_v39 = vpop.permute.xlu0 %1444 }
 0x384   :  { %v583_v20 = vsub.f32 %v559_v2, %v578_v0  ;;  %v1475_v35 = vmul.f32 %v1462_v12, %v1445_v39  ;;  %v2893_v12 = vrot.slane %v4488_v10, %v4551_v23 }
 0x386   :  { %v590_v36 = vmul.f32 1.442695, %v583_v20  ;;  %v1499_v57 = vsub.f32 %v1475_v35, %v4785_v52  ;;  %v1001_v52 = vmul.f32 %v997_v3, %v4486_v9  ;;  %v2906_v39 = vmul.f32 %v2893_v12, %v2876_v42 }
 0x387   :  { %v1299_v47 = vpop.permute.xlu1 %1298  ;;  %v1449_v46 = vpop.permute.xlu0 %1448  ;;  %v1947_v42 = vrot.slane %v4500_v16, %v4533_v51 }
 0x388   :  { %4116 = vpow2.f32 %v590_v36  ;;  %v1503_v53 = vmul.f32 1.442695, %v1499_v57  ;;  %v1476_v62 = vmul.f32 %v1466_v18, %v1449_v46  ;;  %v1951_v57 = vrot.slane %v4506_v19, %v4533_v51 }
 0x389   :  { %v2897_v46 = vrot.slane %v4494_v13, %v4551_v23  ;;  %v1954_v51 = vmul.f32 %v1947_v42, %v4467_v63 }
 0x38a   :  { %4118 = vpow2.f32 %v1503_v53  ;;  %v1955_v13 = vmul.f32 %v1951_v57, %v4484_v8 }
 0x38b   :  { %4120 = vpow2.f32 %v1980_v7  ;;  %v1020_v17 = vpop.permute.xlu1 %1019  ;;  %v1487_v25 = vpop.permute.xlu0 %1486  ;;  %v2907_v63 = vmul.f32 %v2897_v46, %v4860_v43  ;;  %v2905_v46 = vrot.slane %v4506_v19, %v4551_v23 }
 0x38c   :  { %4122 = vpow2.f32 %v1028_v37  ;;  %v1025_v60 = vsub.f32 %v1001_v52, %v1020_v17  ;;  %v1500_v32 = vsub.f32 %v1476_v62, %v1487_v25  ;;  %v1978_v62 = vsub.f32 %v1954_v51, %v4833_v45 }
 0x38d   :  { %4124 = vpow2.f32 %v1507_v38 }
 0x38e   :  { %v1032_v15 = vmul.f32 1.442695, %v1025_v60  ;;  %v1505_v59 = vmul.f32 1.442695, %v1500_v32 }
 0x38f   :  { %v1457_v54 = vpop.permute.xlu0 %1456 }
 0x390   :  { %4126 = vpow2.f32 %v1032_v15  ;;  %v4886_v9 = vpop.permute.xlu1 %2410  ;;  %v1478_v35 = vmul.f32 %v1474_v41, %v1457_v54 }
 0x391   :  { %4128 = vpow2.f32 %v1505_v59  ;;  %v2432_v33 = vmul.f32 %v2428_v56, %v4886_v9  ;;  %v2901_v9 = vrot.slane %v4500_v16, %v4551_v23 }
 0x392   :  { %v4889_v2 = vpop.eup %4116  ;;  %4130 = vpow2.f32 %v2459_v44 }
 0x393   :  { %3798 = vmatmul.mubr.msk.f32.vlgmr.msra.gmra.mrb[10].mxu1 %vm592_vm6, %v4889_v2  ;;  %v4896_v6 = vpop.permute.xlu0 %1775 }
 0x394   :  { %v4119_v0 = vpop.eup %4118  ;;  %3806 = vmatpush3.msra.mxu1 %v4477_v5  ;;  %3807 = vmatprep.mubr.msk.f32.mxu1 %vm4309_vm3, %v4302_v21  ;;  %v1982_v5 = vmul.f32 1.442695, %v1977_v30 }
 0x395   :  { %v4903_v4 = vpop.eup %4120  ;;  %v2913_v10 = vpop.permute.xlu1 %2912  ;;  %3823 = vmatmul.mubr.msk.f32.vlgmr.msra.gmra.mrb[12].mxu0 %vm592_vm6, %v4119_v0  ;;  %3815 = vmatprep.subr.mxu1 %v4302_v21  ;;  %v1511_v34 = vsel %vm592_vm6, %v4119_v0, 0.0 }
 0x396   :  { %v4123_v20 = vpop.eup %4122  ;;  %v2930_v55 = vsub.f32 %v2906_v39, %v2913_v10  ;;  %1512 = vadd.xlane.f32.xlu0 %v1511_v34  ;;  %3832 = vmatprep.mubr.msk.f32.mxu0 %vm4309_vm3, %v4302_v21  ;;  %v1988_v53 = vsel %vm592_vm6, %v4903_v4, 0.0 }
 0x397   :  { %3808 = vmatmul.mubr.msk.f32.vlgmr.msra.gmra.mrb[12].mxu1 %vm592_vm6, %v4123_v20  ;;  %v1497_v36 = vpop.permute.xlu0 %1496  ;;  %v4917_v26 = vpop.eup %4124  ;;  %v1037_v25 = vsel %vm592_vm6, %v4123_v20, 0.0 }
 0x398   :  { %v2934_v3 = vmul.f32 1.442695, %v2930_v55  ;;  %3816 = vmatpush3.msra.mxu1 %v1299_v47  ;;  %v1502_v7 = vsub.f32 %v1478_v35, %v1497_v36  ;;  %3817 = vmatprep.mubr.msk.f32.mxu1 %vm4309_vm3, %v4302_v21  ;;  %v2424_v47 = vrot.slane %v4500_v16, %v4544_v14 }
 0x399   :  { %v1699_v37 = vpop.permute.xlu1 %1698  ;;  %3825 = vmatprep.subr.mxu1 %v4302_v21 }
 0x39a   :  { %v4924_v18 = vpop.eup %4126  ;;  %4132 = vpow2.f32 %v2934_v3  ;;  %v1509_v49 = vmul.f32 1.442695, %v1502_v7  ;;  %3831 = vmatpush3.msra.mxu0 %v1699_v37  ;;  %1989 = vadd.xlane.f32.xlu0 %v1988_v53  ;;  %v2431_v45 = vmul.f32 %v2424_v47, %v4471_v1  ;;  %v1517_v53 = vsel %vm592_vm6, %v4917_v26, 0.0 }
 0x39b   :  { %4134 = vpow2.f32 %v1982_v5  ;;  %3818 = vmatmul.mubr.msk.f32.vlgmr.msra.gmra.mrb[14].mxu1 %vm592_vm6, %v4924_v18  ;;  %3833 = vmatmul.mubr.msk.f32.vlgmr.msra.gmra.mrb[14].mxu0 %vm592_vm6, %v4917_v26  ;;  %v4129_v8 = vpop.eup %4128  ;;  %v1040_v5 = vsel %vm592_vm6, %v4841_v29, 0.0 }
 0x39c   :  { %4136 = vpow2.f32 %v1509_v49  ;;  %3826 = vmatpush3.msra.mxu1 %v4854_v11  ;;  %v1974_v52 = vpop.permute.xlu0 %1973  ;;  %3827 = vmatprep.mubr.msk.f32.mxu1 %vm4309_vm3, %v4302_v21  ;;  %v1984_v11 = vmul.f32 1.442695, %v1978_v62  ;;  %v2455_v43 = vsub.f32 %v2431_v45, %v4837_v61  ;;  %v1514_v1 = vsel %vm592_vm6, %v4129_v8, 0.0  ;;  %v4952_v54 = vpop.eup %4130 }
 0x39d   :  { %v1979_v38 = vsub.f32 %v1955_v13, %v1974_v52  ;;  %v2918_v17 = vpop.permute.xlu1 %2917  ;;  %3835 = vmatprep.subr.mxu1 %v4302_v21  ;;  %3840 = vmatprep.subr.mxu0 %v4302_v21  ;;  %v2468_v0 = vsel %vm592_vm6, %v4952_v54, 0.0  ;;  %v1043_v62 = vsel %vm592_vm6, %v4924_v18, 0.0 }
 0x39e   :  { %v2931_v60 = vsub.f32 %v2907_v63, %v2918_v17  ;;  %1038 = vadd.xlane.f32.xlu0 %v1037_v25  ;;  %3842 = vmatprep.mubr.msk.f32.mxu0 %vm4309_vm3, %v4302_v21  ;;  %v2461_v59 = vmul.f32 1.442695, %v2455_v43 }
 0x39f   :  { %3828 = vmatmul.mubr.msk.f32.vlgmr.msra.gmra.mrb[16].mxu1 %vm592_vm6, %v4129_v8  ;;  %v1986_v48 = vmul.f32 1.442695, %v1979_v38 }
 0x3a0   :  { %v2936_v32 = vmul.f32 1.442695, %v2931_v60  ;;  %3836 = vmatpush3.msra.mxu1 %v4896_v6  ;;  %3837 = vmatprep.mubr.msk.f32.mxu1 %vm4309_vm3, %v4302_v21 }
 0x3a1   :  { %v2022_v50 = vpop.permute.xlu1 %2021  ;;  %v2884_v15 = vpop.permute.xlu0 %2883  ;;  %3845 = vmatprep.subr.mxu1 %v4302_v21 }
 0x3a2   :  { %4138 = vpow2.f32 %v2936_v32  ;;  %3841 = vmatpush3.msra.mxu0 %v2022_v50  ;;  %1515 = vadd.xlane.f32.xlu0 %v1514_v1  ;;  %v2908_v41 = vmul.f32 %v2901_v9, %v2884_v15  ;;  %v599_v15 = vsel %vm592_vm6, %v4839_v40, 0.0  ;;  %v602_v1 = vsel %vm592_vm6, %v4889_v2, 0.0 }
 0x3a3   :  { %3843 = vmatmul.mubr.msk.f32.vlgmr.msra.gmra.mrb[16].mxu0 %vm592_vm6, %v4903_v4  ;;  %3850 = vmatprep.subr.mxu0 %v4302_v21  ;;  %4140 = vpow2.f32 %v1984_v11 }
 0x3a4   :  { %v4959_v61 = vpop.eup %4132  ;;  %3852 = vmatprep.mubr.msk.f32.mxu0 %vm4309_vm3, %v4302_v21  ;;  %4142 = vpow2.f32 %v1986_v48  ;;  %v593_v48 = vsel %vm592_vm6, %v4793_v22, 0.0  ;;  %v596_v22 = vsel %vm592_vm6, %v4814_v58, 0.0 }
 0x3a5   :  { %v4135_v12 = vpop.eup %4134  ;;  %v2451_v14 = vpop.permute.xlu1 %2450  ;;  %v2942_v6 = vsel %vm592_vm6, %v4959_v61, 0.0  ;;  %4144 = vpow2.f32 %v2461_v59 }
 0x3a6   :  { %v2099_v30 = vpop.permute.xlu0 %2098  ;;  %v4968_v44 = vpop.eup %4136  ;;  %v2456_v39 = vsub.f32 %v2432_v33, %v2451_v14  ;;  %2943 = vadd.xlane.f32.xlu1 %v2942_v6  ;;  %2469 = vadd.xlane.f32.xlu0 %v2468_v0  ;;  %v1991_v34 = vsel %vm592_vm6, %v4135_v12, 0.0 }
 0x3a7   :  { %3838 = vmatmul.mubr.msk.f32.vlgmr.msra.gmra.mrb[18].mxu1 %vm592_vm6, %v4968_v44  ;;  %v1520_v17 = vsel %vm592_vm6, %v4968_v44, 0.0 }
 0x3a8   :  { %3846 = vmatpush3.msra.mxu1 %v2099_v30  ;;  %3847 = vmatprep.mubr.msk.f32.mxu1 %vm4309_vm3, %v4302_v21  ;;  %v2463_v4 = vmul.f32 1.442695, %v2456_v39 }
 0x3a9   :  { %3855 = vmatprep.subr.mxu1 %v4302_v21 }
 0x3aa   :  { %v2888_v10 = vpop.permute.xlu0 %2887  ;;  %v2923_v20 = vpop.permute.xlu1 %2922  ;;  %1992 = vadd.xlane.f32.xlu1 %v1991_v34  ;;  %4146 = vpow2.f32 %v2463_v4 }
 0x3ab   :  { %v2932_v42 = vsub.f32 %v2908_v41, %v2923_v20  ;;  %3848 = vmatmul.mubr.msk.f32.vlgmr.msra.gmra.mrb[20].mxu1 %vm592_vm6, %v4135_v12  ;;  %v2909_v37 = vmul.f32 %v2905_v46, %v2888_v10 }
 0x3ac   :  { %v4139_v16 = vpop.eup %4138  ;;  %3857 = vmatprep.mubr.msk.f32.mxu1 %vm4309_vm3, %v4302_v21 }
 0x3ad   :  { %v2938_v35 = vmul.f32 1.442695, %v2932_v42  ;;  %v2945_v36 = vsel %vm592_vm6, %v4139_v16, 0.0  ;;  %v4141_v57 = vpop.eup %4140 }
 0x3ae   :  { %v2253_v55 = vpop.permute.xlu0 %2252  ;;  %v2176_v3 = vpop.permute.xlu1 %2175  ;;  %1041 = vadd.xlane.f32.xlu1 %v1040_v5  ;;  %2946 = vadd.xlane.f32.xlu0 %v2945_v36  ;;  %v1994_v51 = vsel %vm592_vm6, %v4141_v57, 0.0 }
 0x3af   :  { %v4143_v7 = vpop.eup %4142  ;;  %4148 = vpow2.f32 %v2938_v35  ;;  %3856 = vmatpush3.msra.mxu1 %v2253_v55  ;;  %3851 = vmatpush3.msra.mxu0 %v2176_v3 }
 0x3b0   :  { %3858 = vmatmul.mubr.msk.f32.vlgmr.msra.gmra.mrb[22].mxu1 %vm592_vm6, %v4143_v7  ;;  %3853 = vmatmul.mubr.msk.f32.vlgmr.msra.gmra.mrb[18].mxu0 %vm592_vm6, %v4141_v57  ;;  %v4145_v19 = vpop.eup %4144  ;;  %v1997_v11 = vsel %vm592_vm6, %v4143_v7, 0.0 }
 0x3b1   :  { %3865 = vmatprep.subr.mxu1 %v4302_v21  ;;  %3867 = vmatprep.mubr.msk.f32.mxu1 %vm4309_vm3, %v4302_v21  ;;  %v2471_v13 = vsel %vm592_vm6, %v4145_v19, 0.0 }
 0x3b2   :  { %v2576_v29 = vpop.permute.xlu0 %2575  ;;  %v2928_v23 = vpop.permute.xlu1 %2927  ;;  %1518 = vadd.xlane.f32.xlu1 %v1517_v53  ;;  %1995 = vadd.xlane.f32.xlu0 %v1994_v51 }
 0x3b3   :  { %v2933_v47 = vsub.f32 %v2909_v37, %v2928_v23  ;;  %3866 = vmatpush3.msra.mxu1 %v2576_v29  ;;  %3860 = vmatprep.subr.mxu0 %v4302_v21 }
 0x3b4   :  { %3868 = vmatmul.mubr.msk.f32.vlgmr.msra.gmra.mrb[24].mxu1 %vm592_vm6, %v4952_v54  ;;  %3875 = vmatprep.subr.mxu1 %v4302_v21  ;;  %v4147_v52 = vpop.eup %4146 }
 0x3b5   :  { %v2940_v49 = vmul.f32 1.442695, %v2933_v47  ;;  %3877 = vmatprep.mubr.msk.f32.mxu1 %vm4309_vm3, %v4302_v21  ;;  %3862 = vmatprep.mubr.msk.f32.mxu0 %vm4309_vm3, %v4302_v21  ;;  %v2474_v60 = vsel %vm592_vm6, %v4147_v52, 0.0 }
 0x3b6   :  { %v2730_v26 = vpop.permute.xlu0 %2729  ;;  %v2499_v63 = vpop.permute.xlu1 %2498  ;;  %2472 = vadd.xlane.f32.xlu1 %v2471_v13  ;;  %1044 = vadd.xlane.f32.xlu0 %v1043_v62 }
 0x3b7   :  { %4150 = vpow2.f32 %v2940_v49  ;;  %3876 = vmatpush3.msra.mxu1 %v2730_v26  ;;  %3861 = vmatpush3.msra.mxu0 %v2499_v63 }
 0x3b8   :  { %3878 = vmatmul.mubr.msk.f32.vlgmr.msra.gmra.mrb[26].mxu1 %vm592_vm6, %v4147_v52  ;;  %3863 = vmatmul.mubr.msk.f32.vlgmr.msra.gmra.mrb[20].mxu0 %vm592_vm6, %v4831_v24 }
 0x3b9   :  { %v4149_v38 = vpop.eup %4148  ;;  %3885 = vmatprep.subr.mxu1 %v4302_v21  ;;  %3870 = vmatprep.subr.mxu0 %v4302_v21 }
 0x3ba   :  { %v3053_v18 = vpop.permute.xlu0 %3052  ;;  %v2653_v25 = vpop.permute.xlu1 %2652  ;;  %1521 = vadd.xlane.f32.xlu0 %v1520_v17  ;;  %v2948_v8 = vsel %vm592_vm6, %v4149_v38, 0.0  ;;  %3887 = vmatprep.mubr.msk.f32.mxu1 %vm4309_vm3, %v4302_v21 }
 0x3bb   :  { %3886 = vmatpush3.msra.mxu1 %v3053_v18  ;;  %3871 = vmatpush3.msra.mxu0 %v2653_v25 }
 0x3bc   :  { %3872 = vmatprep.mubr.msk.f32.mxu0 %vm4309_vm3, %v4302_v21  ;;  %2949 = vadd.xlane.f32.xlu1 %v2948_v8 }
 0x3bd   :  { %3888 = vmatmul.mubr.msk.f32.vlgmr.msra.gmra.mrb[28].mxu1 %vm592_vm6, %v4139_v16  ;;  %3873 = vmatmul.mubr.msk.f32.vlgmr.msra.gmra.mrb[22].mxu0 %vm592_vm6, %v4145_v19 }
 0x3be   :  { %v3207_v24 = vpop.permute.xlu0 %3206  ;;  %3895 = vmatprep.subr.mxu1 %v4302_v21  ;;  %v2976_v45 = vpop.permute.xlu1 %2975  ;;  %3880 = vmatprep.subr.mxu0 %v4302_v21 }
 0x3bf   :  { %2475 = vadd.xlane.f32.xlu0 %v2474_v60  ;;  %3896 = vmatpush3.msra.mxu1 %v3207_v24 }
 0x3c0   :  { %3881 = vmatpush3.msra.mxu0 %v2976_v45  ;;  %3882 = vmatprep.mubr.msk.f32.mxu0 %vm4309_vm3, %v4302_v21 }
 0x3c1   :  { %v4151_v43 = vpop.eup %4150  ;;  %1998 = vadd.xlane.f32.xlu1 %v1997_v11  ;;  %3883 = vmatmul.mubr.msk.f32.vlgmr.msra.gmra.mrb[24].mxu0 %vm592_vm6, %v4959_v61 }
 0x3c2   :  { %3897 = vmatprep.mubr.msk.f32.mxu1 %vm4309_vm3, %v4302_v21  ;;  %v3130_v32 = vpop.permute.xlu1 %3129  ;;  %3890 = vmatprep.subr.mxu0 %v4302_v21  ;;  %v2951_v50 = vsel %vm592_vm6, %v4151_v43, 0.0 }
 0x3c3   :  { %594 = vadd.xlane.f32.xlu0 %v593_v48  ;;  %3898 = vmatmul.mubr.msk.f32.vlgmr.msra.gmra.mrb[30].mxu1 %vm592_vm6, %v4151_v43 }
 0x3c4   :  { %3891 = vmatpush3.msra.mxu0 %v3130_v32  ;;  %3892 = vmatprep.mubr.msk.f32.mxu0 %vm4309_vm3, %v4302_v21 }
 0x3c5   :  { %2952 = vadd.xlane.f32.xlu1 %v2951_v50  ;;  %3893 = vmatmul.mubr.msk.f32.vlgmr.msra.gmra.mrb[26].mxu0 %vm592_vm6, %v4149_v38 }
 0x3c6   :  { %3441 = vmatprep.mubr.f32.mxu0 %v4302_v21 }
 0x3c7   :  { %600 = vadd.xlane.f32.xlu0 %v599_v15 }
 0x3c9   :  { %597 = vadd.xlane.f32.xlu1 %v596_v22 }
 0x3cd   :  { %603 = vadd.xlane.f32.xlu1 %v602_v1 }
 0x3f4   :  { %v1036_v54 = vpop.xlane.xlu1 %1035 }
 0x3f5   :  { %4152 = vrcp.f32 %v1036_v54 }
 0x3f8   :  { %v5049_v44 = vpop.xlane.xlu1 %2466 }
 0x3ff   :  { %v4153_v56 = vpop.eup %4152 }
 0x400   :  { %v1050_v61 = vmul.f32 %v4153_v56, %v1036_v54 }
 0x402   :  { %v1054_v59 = vsub.f32 2.0, %v1050_v61 }
 0x404   :  { %v1058_v33 = vmul.f32 %v4153_v56, %v1054_v59 }
 0x41f   :  { %v1139_v12 = vpop.f32.mrb[8].mxu0 }
 0x420   :  { %v5044_v14 = vpop.f32.mrb[4].mxu1  ;;  %v1374_v40 = vmul.f32 %v1139_v12, %v1058_v33  ;;  %v3804_v30 = vpop.f32.mrb[9].mxu0 }
 0x421   :  { %v3784_v6 = vpop.f32.mrb[5].mxu1 }
 0x422   :  { %1382 = vrot.lane.b32.xlu0 %v1374_v40, %s4315_s12 }
 0x423   :  { %v1513_v58 = vpop.xlane.xlu0 %1512 }
 0x427   :  { %v5047_v0 = vpop.xlane.xlu0 %1989 }
 0x42b   :  { %v1039_v2 = vpop.xlane.xlu0 %1038 }
 0x42f   :  { %v5051_v39 = vpop.xlane.xlu0 %1515 }
 0x433   :  { %v5053_v9 = vpop.f32.mrb[6].mxu1  ;;  %v5055_v41 = vpop.xlane.xlu1 %2943 }
 0x434   :  { %v3789_v4 = vpop.f32.mrb[7].mxu1  ;;  %v5057_v10 = vpop.xlane.xlu0 %2469 }
 0x437   :  { %v5059_v34 = vpop.xlane.xlu1 %1992 }
 0x43b   :  { %v1042_v20 = vpop.xlane.xlu1 %1041  ;;  %v5061_v42 = vpop.xlane.xlu0 %2946 }
 0x43c   :  { %4154 = vrcp.f32 %v1042_v20 }
 0x43f   :  { %v1519_v16 = vpop.xlane.xlu1 %1518  ;;  %v5063_v35 = vpop.xlane.xlu0 %1995 }
 0x443   :  { %v5065_v55 = vpop.xlane.xlu1 %2472  ;;  %v5067_v5 = vpop.xlane.xlu0 %1044 }
 0x446   :  { %v4155_v36 = vpop.eup %4154 }
 0x447   :  { %v1052_v57 = vmul.f32 %v4155_v36, %v1042_v20  ;;  %v836_v3 = vpop.f32.mrb[8].mxu1  ;;  %v5069_v7 = vpop.xlane.xlu0 %1521 }
 0x448   :  { %v1293_v46 = vpop.f32.mrb[10].mxu0  ;;  %v3794_v37 = vpop.f32.mrb[9].mxu1 }
 0x449   :  { %v1056_v29 = vsub.f32 2.0, %v1052_v57  ;;  %v3814_v53 = vpop.f32.mrb[11].mxu0  ;;  %v5071_v51 = vpop.xlane.xlu1 %2949 }
 0x44b   :  { %v1060_v19 = vmul.f32 %v4155_v36, %v1056_v29 }
 0x44c   :  { %v5073_v23 = vpop.xlane.xlu0 %2475 }
 0x44d   :  { %v1376_v47 = vmul.f32 %v1293_v46, %v1060_v19 }
 0x44e   :  { %v5075_v49 = vpop.xlane.xlu1 %1998 }
 0x44f   :  { %1386 = vrot.lane.b32.xlu0 %v1376_v47, %s4315_s12 }
 0x450   :  { %v595_v26 = vpop.xlane.xlu0 %594 }
 0x451   :  { %4156 = vrcp.f32 %v595_v26 }
 0x452   :  { %4158 = vrcp.f32 %v1513_v58  ;;  %v5078_v13 = vpop.xlane.xlu1 %2952 }
 0x454   :  { %v601_v62 = vpop.xlane.xlu0 %600 }
 0x455   :  { %4160 = vrcp.f32 %v601_v62 }
 0x456   :  { %4162 = vrcp.f32 %v1039_v2  ;;  %v598_v63 = vpop.xlane.xlu1 %597 }
 0x457   :  { %4164 = vrcp.f32 %v598_v63 }
 0x458   :  { %4166 = vrcp.f32 %v1519_v16 }
 0x45a   :  { %v604_v52 = vpop.xlane.xlu1 %603 }
 0x45b   :  { %v4157_v38 = vpop.eup %4156  ;;  %4168 = vrcp.f32 %v604_v52 }
 0x45c   :  { %v4159_v18 = vpop.eup %4158  ;;  %4170 = vrcp.f32 %v5051_v39  ;;  %v609_v17 = vmul.f32 %v4157_v38, %v595_v26 }
 0x45d   :  { %v1527_v24 = vmul.f32 %v4159_v18, %v1513_v58  ;;  %4172 = vrcp.f32 %v5047_v0 }
 0x45e   :  { %v613_v25 = vsub.f32 2.0, %v609_v17  ;;  %4174 = vrcp.f32 %v5067_v5 }
 0x45f   :  { %v4161_v8 = vpop.eup %4160  ;;  %v1531_v22 = vsub.f32 2.0, %v1527_v24  ;;  %4176 = vrcp.f32 %v5069_v7 }
 0x460   :  { %v4163_v45 = vpop.eup %4162  ;;  %v617_v60 = vmul.f32 %v4157_v38, %v613_v25  ;;  %v611_v11 = vmul.f32 %v4161_v8, %v601_v62  ;;  %4178 = vrcp.f32 %v5059_v34 }
 0x461   :  { %v4165_v43 = vpop.eup %4164  ;;  %v1051_v1 = vmul.f32 %v4163_v45, %v1039_v2  ;;  %v1535_v4 = vmul.f32 %v4159_v18, %v1531_v22  ;;  %4180 = vrcp.f32 %v5063_v35 }
 0x462   :  { %v4167_v32 = vpop.eup %4166  ;;  %v913_v48 = vmul.f32 %v5044_v14, %v617_v60  ;;  %v615_v50 = vsub.f32 2.0, %v611_v11  ;;  %v610_v15 = vmul.f32 %v4165_v43, %v598_v63  ;;  %4182 = vrcp.f32 %v5075_v49 }
 0x463   :  { %v1529_v59 = vmul.f32 %v4167_v32, %v1519_v16  ;;  %v1055_v14 = vsub.f32 2.0, %v1051_v1  ;;  %4184 = vrcp.f32 %v5057_v10 }
 0x464   :  { %v619_v54 = vmul.f32 %v4161_v8, %v615_v50  ;;  %v614_v56 = vsub.f32 2.0, %v610_v15  ;;  %918 = vst.msk [vmem:[#allocation3] sm:$0xff] %vm917_vm7, %v913_v48  ;;  %4186 = vrcp.f32 %v5049_v44 }
 0x465   :  { %v4169_v61 = vpop.eup %4168  ;;  %v1533_v16 = vsub.f32 2.0, %v1529_v59  ;;  %v1059_v19 = vmul.f32 %v4163_v45, %v1055_v14  ;;  %4188 = vrcp.f32 %v5073_v23 }
 0x466   :  { %v4171_v33 = vpop.eup %4170  ;;  %v915_v12 = vmul.f32 %v836_v3, %v619_v54  ;;  %v618_v40 = vmul.f32 %v4165_v43, %v614_v56  ;;  %v612_v30 = vmul.f32 %v4169_v61, %v604_v52  ;;  %v909_v6 = vpop.f32.mrb[10].mxu1  ;;  %4190 = vrcp.f32 %v5061_v42 }
 0x467   :  { %v3799_v58 = vpop.f32.mrb[11].mxu1  ;;  %v4173_v57 = vpop.eup %4172  ;;  %v1528_v46 = vmul.f32 %v4171_v33, %v5051_v39  ;;  %v1537_v52 = vmul.f32 %v4167_v32, %v1533_v16  ;;  %4192 = vrcp.f32 %v5065_v55 }
 0x468   :  { %v914_v2 = vmul.f32 %v5053_v9, %v618_v40  ;;  %v616_v20 = vsub.f32 2.0, %v612_v30  ;;  %920 = vst.msk [vmem:[#allocation3 + $0x10] sm:$0xff] %vm917_vm7, %v915_v12  ;;  %v1616_v36 = vpop.f32.mrb[12].mxu0  ;;  %v2004_v9 = vmul.f32 %v4173_v57, %v5047_v0  ;;  %v4175_v62 = vpop.eup %4174  ;;  %4194 = vrcp.f32 %v5055_v41 }
 0x469   :  { %v1851_v37 = vmul.f32 %v1616_v36, %v1535_v4  ;;  %v3824_v3 = vpop.f32.mrb[13].mxu0  ;;  %v1532_v63 = vsub.f32 2.0, %v1528_v46  ;;  %v4177_v38 = vpop.eup %4176  ;;  %v1053_v45 = vmul.f32 %v4175_v62, %v5067_v5  ;;  %v3315_v36 = vld [vmem:[#allocation9 + $0x20] sm:$0xff]  ;;  %4196 = vrcp.f32 %v5078_v13 }
 0x46a   :  { %v620_v29 = vmul.f32 %v4169_v61, %v616_v20  ;;  %919 = vst.msk [vmem:[#allocation3 + $0x8] sm:$0xff] %vm917_vm7, %v914_v2  ;;  %v1216_v53 = vpop.f32.mrb[12].mxu1  ;;  %v2008_v0 = vsub.f32 2.0, %v2004_v9  ;;  %v1530_v60 = vmul.f32 %v4177_v38, %v5069_v7  ;;  %v4179_v43 = vpop.eup %4178  ;;  %v3312_v20 = vld [vmem:[#allocation9 + $0x8] sm:$0xff]  ;;  %v3313_v3 = vld [vmem:[#allocation9 + $0x10] sm:$0xff]  ;;  %4198 = vrcp.f32 %v5071_v51 }
 0x46b   :  { %v3809_v47 = vpop.f32.mrb[13].mxu1  ;;  %1859 = vrot.lane.b32.xlu1 %v1851_v37, %s4316_s13  ;;  %v1375_v39 = vmul.f32 %v1216_v53, %v1059_v19  ;;  %v1536_v11 = vmul.f32 %v4171_v33, %v1532_v63  ;;  %v2005_v22 = vmul.f32 %v4179_v43, %v5059_v34  ;;  %v1057_v1 = vsub.f32 2.0, %v1053_v45  ;;  %v4181_v56 = vpop.eup %4180  ;;  %v3314_v37 = vld [vmem:[#allocation9 + $0x18] sm:$0xff]  ;;  %v3320_v45 = vld [vmem:[#allocation9 + $0x48] sm:$0xff] }
 0x46c   :  { %v916_v26 = vmul.f32 %v909_v6, %v620_v29  ;;  %v2012_v15 = vmul.f32 %v4173_v57, %v2008_v0  ;;  %v1534_v54 = vsub.f32 2.0, %v1530_v60  ;;  %v4183_v61 = vpop.eup %4182  ;;  %v2006_v34 = vmul.f32 %v4181_v56, %v5063_v35  ;;  %v3311_v57 = vld [vmem:[#allocation9] sm:$0xff] }
 0x46d   :  { %v2009_v12 = vsub.f32 2.0, %v2005_v22  ;;  %v1061_v33 = vmul.f32 %v4175_v62, %v1057_v1  ;;  %v5106_v30 = vpop.eup %4184  ;;  %v2007_v6 = vmul.f32 %v4183_v61, %v5075_v49  ;;  %v3994_v16 = vpack.c.bf16 %v3315_v36, %v3312_v20  ;;  %v3316_v49 = vld [vmem:[#allocation9 + $0x28] sm:$0xff]  ;;  %v3319_v60 = vld [vmem:[#allocation9 + $0x40] sm:$0xff] }
 0x46e   :  { %921 = vst.msk [vmem:[#allocation3 + $0x18] sm:$0xff] %vm917_vm7, %v916_v26  ;;  %v1370_v18 = vpop.f32.mrb[14].mxu1  ;;  %v1770_v17 = vpop.f32.mrb[14].mxu0  ;;  %v1538_v40 = vmul.f32 %v4177_v38, %v1534_v54  ;;  %v2482_v46 = vmul.f32 %v5106_v30, %v5057_v10  ;;  %v2010_v53 = vsub.f32 2.0, %v2006_v34  ;;  %v3996_v9 = vpack.c.bf16 %v3314_v37, %v3311_v57  ;;  %v3318_v38 = vld [vmem:[#allocation9 + $0x38] sm:$0xff]  ;;  %v3328_v20 = vld [vmem:[#allocation9 + $0x88] sm:$0xff] }
 0x46f   :  { %v1853_v25 = vmul.f32 %v1770_v17, %v1537_v52  ;;  %v3819_v8 = vpop.f32.mrb[15].mxu1  ;;  %v3834_v24 = vpop.f32.mrb[15].mxu0  ;;  %1384 = vrot.lane.b32.xlu1 %v1375_v39, %s4315_s12  ;;  %v1377_v58 = vmul.f32 %v1370_v18, %v1061_v33  ;;  %v2013_v35 = vmul.f32 %v4179_v43, %v2009_v12  ;;  %v2011_v19 = vsub.f32 2.0, %v2007_v6  ;;  %3995 = vmatprep.subr.bf16.mxu0 %v3994_v16  ;;  %v3321_v18 = vld [vmem:[#allocation9 + $0x50] sm:$0xff]  ;;  %v3327_v12 = vld [vmem:[#allocation9 + $0x80] sm:$0xff] }
 0x470   :  { %v5117_v29 = vpop.eup %4186  ;;  %v4018_v26 = vpack.c.bf16 %v3316_v49, %v3313_v3  ;;  %3997 = vmatpush1.bf16.msra.mxu0 %v3996_v9  ;;  %v2486_v52 = vsub.f32 2.0, %v2482_v46  ;;  %v3317_v17 = vld [vmem:[#allocation9 + $0x30] sm:$0xff]  ;;  %v2014_v24 = vmul.f32 %v4181_v56, %v2010_v53  ;;  %v3998_v0 = vpack.c.bf16 %v3321_v18, %v3318_v38  ;;  %v3323_v33 = vld [vmem:[#allocation9 + $0x60] sm:$0xff]  ;;  %v3330_v3 = vld [vmem:[#allocation9 + $0x98] sm:$0xff] }
 0x471   :  { %1863 = vrot.lane.b32.xlu0 %v1853_v25, %s4316_s13  ;;  %v4189_v62 = vpop.eup %4188  ;;  %v2481_v10 = vmul.f32 %v5117_v29, %v5049_v44  ;;  %v2015_v8 = vmul.f32 %v4183_v61, %v2011_v19  ;;  %v3333_v49 = vld [vmem:[#allocation9 + $0xb0] sm:$0xff] }
 0x472   :  { %v1693_v32 = vpop.f32.mrb[16].mxu1  ;;  %4019 = vmatprep.subr.bf16.mxu1 %v4018_v26  ;;  %v2484_v25 = vmul.f32 %v4189_v62, %v5073_v23  ;;  %v5127_v43 = vpop.eup %4190  ;;  %3999 = vmatprep.subr.bf16.mxu0 %v3998_v0  ;;  %v3329_v53 = vld [vmem:[#allocation9 + $0x90] sm:$0xff]  ;;  %v3339_v0 = vld [vmem:[#allocation9 + $0xe0] sm:$0xff] }
 0x473   :  { %v1852_v48 = vmul.f32 %v1693_v32, %v1536_v11  ;;  %v3829_v50 = vpop.f32.mrb[17].mxu1  ;;  %4021 = vmatpush3.bf16.msra.mxu1 %v4018_v26  ;;  %v3322_v11 = vld [vmem:[#allocation9 + $0x58] sm:$0xff]  ;;  %v5129_v22 = vpop.eup %4192  ;;  %v2485_v23 = vsub.f32 2.0, %v2481_v10  ;;  %v2959_v56 = vmul.f32 %v5127_v43, %v5061_v42  ;;  %v3332_v10 = vld [vmem:[#allocation9 + $0xa8] sm:$0xff] }
 0x474   :  { %v4000_v50 = vpack.c.bf16 %v3320_v45, %v3317_v17  ;;  %v2488_v61 = vsub.f32 2.0, %v2484_v25  ;;  %v2483_v34 = vmul.f32 %v5129_v22, %v5065_v55  ;;  %v3335_v45 = vld [vmem:[#allocation9 + $0xc0] sm:$0xff] }
 0x475   :  { %v2963_v16 = vsub.f32 2.0, %v2959_v56  ;;  %v2489_v55 = vmul.f32 %v5117_v29, %v2485_v23  ;;  %v4008_v29 = vpack.c.bf16 %v3332_v10, %v3329_v53 }
 0x476   :  { %v2093_v5 = vpop.f32.mrb[16].mxu0  ;;  %4001 = vmatpush1.bf16.msra.mxu0 %v4000_v50  ;;  %v2492_v37 = vmul.f32 %v4189_v62, %v2488_v61  ;;  %v3337_v50 = vld [vmem:[#allocation9 + $0xd0] sm:$0xff] }
 0x477   :  { %v2328_v7 = vmul.f32 %v2093_v5, %v2012_v15  ;;  %v3844_v59 = vpop.f32.mrb[17].mxu0  ;;  %v4022_v15 = vpack.c.bf16 %v3322_v11, %v3319_v60  ;;  %v2967_v11 = vmul.f32 %v5127_v43, %v2963_v16 }
 0x478   :  { %v3324_v59 = vld [vmem:[#allocation9 + $0x68] sm:$0xff] }
 0x479   :  { %2336 = vrot.lane.b32.xlu1 %v2328_v7, %s4314_s11  ;;  %4023 = vmatprep.subr.bf16.mxu1 %v4022_v15  ;;  %v2490_v7 = vmul.f32 %v5106_v30, %v2486_v52  ;;  %v3334_v52 = vld [vmem:[#allocation9 + $0xb8] sm:$0xff] }
 0x47a   :  { %v1847_v14 = vpop.f32.mrb[18].mxu1  ;;  %4025 = vmatpush3.bf16.msra.mxu1 %v4022_v15  ;;  %v3340_v15 = vld [vmem:[#allocation9 + $0xe8] sm:$0xff] }
 0x47b   :  { %v5111_v4 = vmul.f32 %v1847_v14, %v1538_v40  ;;  %v3839_v2 = vpop.f32.mrb[19].mxu1  ;;  %v5137_v40 = vpop.eup %4194  ;;  %v4002_v14 = vpack.c.bf16 %v3327_v12, %v3324_v59 }
 0x47c   :  { %v3325_v2 = vld [vmem:[#allocation9 + $0x70] sm:$0xff]  ;;  %v5141_v46 = vpop.eup %4196 }
 0x47d   :  { %1388 = vrot.lane.b32.xlu1 %v1377_v58, %s4315_s12  ;;  %v3326_v58 = vld [vmem:[#allocation9 + $0x78] sm:$0xff]  ;;  %v4026_v30 = vpack.c.bf16 %v3328_v20, %v3325_v2  ;;  %4003 = vmatprep.subr.bf16.mxu0 %v4002_v14  ;;  %v5149_v19 = vpop.eup %4198  ;;  %v3343_v14 = vld [vmem:[#allocation9 + $0x100] sm:$0xff] }
 0x47e   :  { %v2170_v47 = vpop.f32.mrb[20].mxu1  ;;  %v4004_v57 = vpack.c.bf16 %v3326_v58, %v3323_v33  ;;  %v3342_v33 = vld [vmem:[#allocation9 + $0xf8] sm:$0xff] }
 0x47f   :  { %v5119_v63 = vmul.f32 %v2170_v47, %v2013_v35  ;;  %v3849_v39 = vpop.f32.mrb[21].mxu1  ;;  %v5145_v35 = vmul.f32 %v5137_v40, %v5055_v41  ;;  %v2487_v47 = vsub.f32 2.0, %v2483_v34  ;;  %4027 = vmatprep.subr.bf16.mxu1 %v4026_v30  ;;  %v3331_v41 = vld [vmem:[#allocation9 + $0xa0] sm:$0xff]  ;;  %v3345_v34 = vld [vmem:[#allocation9 + $0x110] sm:$0xff]  ;;  %v3346_v58 = vld [vmem:[#allocation9 + $0x118] sm:$0xff] }
 0x480   :  { %4005 = vmatpush1.bf16.msra.mxu0 %v4004_v57  ;;  %v4006_v39 = vpack.c.bf16 %v3333_v49, %v3330_v3  ;;  %4029 = vmatpush3.bf16.msra.mxu1 %v4026_v30  ;;  %v4030_v25 = vpack.c.bf16 %v3334_v52, %v3331_v41 }
 0x481   :  { %1861 = vrot.lane.b32.xlu1 %v1852_v48, %s4316_s13  ;;  %v2962_v60 = vsub.f32 2.0, %v5145_v35 }
 0x482   :  { %4007 = vmatprep.subr.bf16.mxu0 %v4006_v39  ;;  %4031 = vmatprep.subr.bf16.mxu1 %v4030_v25 }
 0x483   :  { %v2324_v44 = vpop.f32.mrb[22].mxu1  ;;  %v2247_v32 = vpop.f32.mrb[18].mxu0  ;;  %v2966_v20 = vmul.f32 %v5137_v40, %v2962_v60 }
 0x484   :  { %v5131_v48 = vmul.f32 %v2324_v44, %v2015_v8  ;;  %v2330_v1 = vmul.f32 %v2247_v32, %v2014_v24  ;;  %v3859_v54 = vpop.f32.mrb[23].mxu1  ;;  %v3854_v5 = vpop.f32.mrb[19].mxu0  ;;  %v2961_v8 = vmul.f32 %v5141_v46, %v5078_v13  ;;  %v3336_v24 = vld [vmem:[#allocation9 + $0xc8] sm:$0xff]  ;;  %4009 = vmatpush1.bf16.msra.mxu0 %v4008_v29  ;;  %v3338_v32 = vld [vmem:[#allocation9 + $0xd8] sm:$0xff]  ;;  %v2491_v13 = vmul.f32 %v5129_v22, %v2487_v47 }
 0x485   :  { %v4010_v44 = vpack.c.bf16 %v3339_v0, %v3336_v24  ;;  %v4012_v54 = vpack.c.bf16 %v3338_v32, %v3335_v45  ;;  %v4034_v5 = vpack.c.bf16 %v3340_v15, %v3337_v50  ;;  %4033 = vmatpush3.bf16.msra.mxu1 %v4030_v25  ;;  %v3344_v22 = vld [vmem:[#allocation9 + $0x108] sm:$0xff]  ;;  %v3347_v32 = vld [vmem:[%s5233_s4] sm:$0x7]  ;;  %s4317_s4 = smov [#allocation10]  }
 0x486   :  { %2340 = vrot.lane.b32.xlu1 %v2330_v1, %s4314_s11  ;;  %v2960_v1 = vmul.f32 %v5149_v19, %v5071_v51  ;;  %v2965_v61 = vsub.f32 2.0, %v2961_v8  ;;  %v4014_v51 = vpack.c.bf16 %v3345_v34, %v3342_v33  ;;  %v3352_v50 = vrot.slane %v3347_v32, %v4514_v28  ;;  %s3568_s16 = sshll.u32 %s4317_s4, 4  ;;  %s3569_s16 = int_to_ptr.vmem [resolvable:$true] %s3568_s16 }
 0x487   :  { %v2647_v6 = vpop.f32.mrb[24].mxu1  ;;  %4011 = vmatprep.subr.bf16.mxu0 %v4010_v44  ;;  %4035 = vmatprep.subr.bf16.mxu1 %v4034_v5  ;;  %v3356_v15 = vrot.slane %v3347_v32, %v4512_v27  ;;  %s4266_s18 = scalar_lea.vmem %s3569_s16, 1536  ;;  %p4271_p11 = scmp.lt.s32.totalorder %s3569_s16, %s3569_s16 }
 0x488   :  { %v2806_v42 = vmul.f32 %v2647_v6, %v2490_v7  ;;  %v3869_v36 = vpop.f32.mrb[25].mxu1  ;;  %v3341_v6 = vld [vmem:[#allocation9 + $0xf0] sm:$0xff]  ;;  %4013 = vmatpush1.bf16.msra.mxu0 %v4012_v54  ;;  %v2964_v2 = vsub.f32 2.0, %v2960_v1  ;;  %v3360_v1 = vrot.slane %v3347_v32, %v4516_v31  ;;  %p4267_p10 = scmp.ne.s32.totalorder %s3569_s16, %s4266_s18  ;;  %p4272_p12 = scmp.lt.s32.totalorder %s4266_s18, %s4266_s18 }
 0x489   :  { %v4038_v36 = vpack.c.bf16 %v3346_v58, %v3343_v14  ;;  %4037 = vmatpush3.bf16.msra.mxu1 %v4034_v5  ;;  %4015 = vmatprep.subr.bf16.mxu0 %v4014_v51 }
 0x48a   :  { %2815 = vrot.lane.b32.xlu1 %v2806_v42, %s4313_s10  ;;  %v4016_v42 = vpack.c.bf16 %v3344_v22, %v3341_v6  ;;  %v2968_v3 = vmul.f32 %v5149_v19, %v2964_v2  ;;  %p4273_p13 = por %p4272_p12, %p4271_p11 }
 0x48b   :  { %v2801_v9 = vpop.f32.mrb[26].mxu1  ;;  %v2570_v26 = vpop.f32.mrb[20].mxu0  ;;  %4039 = vmatprep.subr.bf16.mxu1 %v4038_v36 }
 0x48c   :  { %v5151_v38 = vmul.f32 %v2801_v9, %v2492_v37  ;;  %v2805_v62 = vmul.f32 %v2570_v26, %v2489_v55  ;;  %v3879_v18 = vpop.f32.mrb[27].mxu1  ;;  %v3864_v17 = vpop.f32.mrb[21].mxu0  ;;  %4017 = vmatpush1.bf16.msra.mxu0 %v4016_v42  ;;  %p4274_p0 = pnand %p4273_p13, %p4267_p10 }
 0x48d   :  { %4041 = vmatpush3.bf16.msra.mxu1 %v4038_v36 }
 0x48e   :  { %2813 = vrot.lane.b32.xlu0 %v2805_v62, %s4313_s10 }
 0x490   :  { %v3124_v23 = vpop.f32.mrb[28].mxu1  ;;  %v2724_v56 = vpop.f32.mrb[22].mxu0 }
 0x491   :  { %v3283_v7 = vmul.f32 %v3124_v23, %v2967_v11  ;;  %v2807_v43 = vmul.f32 %v2724_v56, %v2491_v13  ;;  %v3889_v59 = vpop.f32.mrb[29].mxu1  ;;  %v3874_v12 = vpop.f32.mrb[23].mxu0 }
 0x492   :  { %2338 = vrot.lane.b32.xlu0 %v5119_v63, %s4314_s11  ;;  %v2969_v63 = vmul.f32 %v5141_v46, %v2965_v61 }
 0x493   :  { %3292 = vrot.lane.b32.xlu1 %v3283_v7, %s4312_s9 }
 0x494   :  { %v3047_v57 = vpop.f32.mrb[24].mxu0  ;;  %v1383_v30 = vpop.permute.xlu0 %1382 }
 0x495   :  { %v3282_v35 = vmul.f32 %v3047_v57, %v2966_v20  ;;  %v3884_v16 = vpop.f32.mrb[25].mxu0  ;;  %1395 = vst.msk [vmem:[#allocation3] sm:$0xff] %vm1394_vm8, %v1383_v30 }
 0x496   :  { %v3278_v37 = vpop.f32.mrb[30].mxu1  ;;  %2817 = vrot.lane.b32.xlu0 %v2807_v43, %s4313_s10 }
 0x497   :  { %v3285_v55 = vmul.f32 %v3278_v37, %v2969_v63  ;;  %1865 = vrot.lane.b32.xlu1 %v5111_v4, %s4316_s13  ;;  %v3899_v40 = vpop.f32.mrb[31].mxu1 }
 0x498   :  { %v3201_v49 = vpop.f32.mrb[26].mxu0 }
 0x499   :  { %v3284_v53 = vmul.f32 %v3201_v49, %v2968_v3  ;;  %v3894_v47 = vpop.f32.mrb[27].mxu0 }
 0x49a   :  { %3290 = vrot.lane.b32.xlu0 %v3282_v35, %s4312_s9 }
 0x49b   :  { %2819 = vrot.lane.b32.xlu1 %v5151_v38, %s4313_s10 }
 0x49e   :  { %3294 = vrot.lane.b32.xlu0 %v3284_v53, %s4312_s9 }
 0x4a2   :  { %2342 = vrot.lane.b32.xlu0 %v5131_v48, %s4314_s11 }
 0x4a6   :  { %3296 = vrot.lane.b32.xlu0 %v3285_v55, %s4312_s9 }
 0x4c1   :  { %v1387_v4 = vpop.permute.xlu0 %1386 }
 0x4c2   :  { %1397 = vst.msk [vmem:[#allocation3 + $0x10] sm:$0xff] %vm1394_vm8, %v1387_v4 }
 0x4dd   :  { %v1860_v46 = vpop.permute.xlu1 %1859 }
 0x4de   :  { %1872 = vst.msk [vmem:[#allocation3] sm:$0xff] %vm1871_vm9, %v1860_v46 }
 0x4e1   :  { %v1385_v19 = vpop.permute.xlu1 %1384 }
 0x4e2   :  { %1396 = vst.msk [vmem:[#allocation3 + $0x8] sm:$0xff] %vm1394_vm8, %v1385_v19 }
 0x4e3   :  { %v1864_v9 = vpop.permute.xlu0 %1863 }
 0x4e4   :  { %1874 = vst.msk [vmem:[#allocation3 + $0x10] sm:$0xff] %vm1871_vm9, %v1864_v9 }
 0x4eb   :  { %v2337_v26 = vpop.permute.xlu1 %2336 }
 0x4ec   :  { %2349 = vst.msk [vmem:[#allocation3] sm:$0xff] %vm2348_vm10, %v2337_v26 }
 0x4ef   :  { %v1389_v48 = vpop.permute.xlu1 %1388 }
 0x4f0   :  { %1398 = vst.msk [vmem:[#allocation3 + $0x18] sm:$0xff] %vm1394_vm8, %v1389_v48 }
 0x4f3   :  { %v1862_v39 = vpop.permute.xlu1 %1861 }
 0x4f4   :  { %1873 = vst.msk [vmem:[#allocation3 + $0x8] sm:$0xff] %vm1871_vm9, %v1862_v39 }
 0x4f8   :  { %v2341_v10 = vpop.permute.xlu1 %2340 }
 0x4f9   :  { %2351 = vst.msk [vmem:[#allocation3 + $0x10] sm:$0xff] %vm2348_vm10, %v2341_v10 }
 0x4fc   :  { %v2816_v52 = vpop.permute.xlu1 %2815 }
 0x500   :  { %v2814_v41 = vpop.permute.xlu0 %2813 }
 0x501   :  { %2826 = vst.msk [vmem:[#allocation3] sm:$0xff] %vm2825_vm11, %v2814_v41 }
 0x504   :  { %v2339_v38 = vpop.permute.xlu0 %2338 }
 0x505   :  { %v3293_v62 = vpop.permute.xlu1 %3292  ;;  %2350 = vst.msk [vmem:[#allocation3 + $0x8] sm:$0xff] %vm2348_vm10, %v2339_v38 }
 0x506   :  { %2827 = vst.msk [vmem:[#allocation3 + $0x8] sm:$0xff] %vm2825_vm11, %v2816_v52 }
 0x507   :  { %3304 = vst.msk [vmem:[#allocation3 + $0x8] sm:$0xff] %vm3302_vm12, %v3293_v62 }
 0x508   :  { %v2818_v18 = vpop.permute.xlu0 %2817 }
 0x509   :  { %v1866_v17 = vpop.permute.xlu1 %1865  ;;  %2828 = vst.msk [vmem:[#allocation3 + $0x10] sm:$0xff] %vm2825_vm11, %v2818_v18 }
 0x50a   :  { %1875 = vst.msk [vmem:[#allocation3 + $0x18] sm:$0xff] %vm1871_vm9, %v1866_v17 }
 0x50c   :  { %v3291_v29 = vpop.permute.xlu0 %3290 }
 0x50d   :  { %3303 = vst.msk [vmem:[#allocation3] sm:$0xff] %vm3302_vm12, %v3291_v29  ;;  %v2820_v0 = vpop.permute.xlu1 %2819 }
 0x50e   :  { %v3308_v45 = vld [vmem:[#allocation3 + $0x8] sm:$0xff] }
 0x510   :  { %v3295_v25 = vpop.permute.xlu0 %3294 }
 0x511   :  { %3305 = vst.msk [vmem:[#allocation3 + $0x10] sm:$0xff] %vm3302_vm12, %v3295_v25 }
 0x514   :  { %v2343_v8 = vpop.permute.xlu0 %2342  ;;  %v3307_v24 = vld [vmem:[#allocation3] sm:$0xff] }
 0x515   :  { %2352 = vst.msk [vmem:[#allocation3 + $0x18] sm:$0xff] %vm2348_vm10, %v2343_v8  ;;  %3606 = vmatmul.mubr.msk.f32.vlgmr.msra.gmra.mrb[28].mxu0 %vm3364_vm13, %v3307_v24  ;;  %3924 = vmatprep.mubr.msk.f32.mxu1 %vm3364_vm13, %v3307_v24 }
 0x516   :  { %2829 = vst.msk [vmem:[#allocation3 + $0x18] sm:$0xff] %vm2825_vm11, %v2820_v0  ;;  %3925 = vmatmul.mubr.msk.f32.vlgmr.msra.gmra.mrb[32].mxu1 %vm3364_vm13, %v3308_v45  ;;  %3447 = vmatprep.mubr.f32.mxu0 %v4302_v21 }
 0x518   :  { %v3297_v60 = vpop.permute.xlu0 %3296  ;;  %v3309_v11 = vld [vmem:[#allocation3 + $0x10] sm:$0xff] }
 0x519   :  { %3306 = vst.msk [vmem:[#allocation3 + $0x18] sm:$0xff] %vm3302_vm12, %v3297_v60  ;;  %3607 = vmatmul.mubr.msk.f32.gmra.mrb[30].mxu0 %vm3364_vm13, %v3308_v45  ;;  %3927 = vmatprep.mubr.msk.f32.mxu1 %vm3364_vm13, %v3309_v11 }
 0x51a   :  { %3453 = vmatprep.mubr.f32.mxu0 %v4302_v21 }
 0x51d   :  { %3608 = vmatmul.mubr.msk.f32.gmra.mrb[32].mxu0 %vm3364_vm13, %v3309_v11 }
 0x51e   :  { %3459 = vmatprep.mubr.f32.mxu0 %v4302_v21 }
 0x520   :  { %v3310_v44 = vld [vmem:[#allocation3 + $0x18] sm:$0xff] }
 0x521   :  { %3609 = vmatmul.mubr.msk.f32.gmra.mrb[34].mxu0 %vm3364_vm13, %v3310_v44  ;;  %3928 = vmatmul.mubr.msk.f32.gmra.mrb[34].mxu1 %vm3364_vm13, %v3310_v44 }
 0x5e8   :  { %v3443_v13 = vpop.f32.mrb[28].mxu0 }
 0x5e9   :  { %v3444_v54 = vadd.f32 %v3443_v13, %v3352_v50  ;;  %v3445_v5 = vpop.f32.mrb[29].mxu0  ;;  %v3926_v23 = vpop.f32.mrb[32].mxu1 }
 0x5ea   :  { %v3446_v21 = vadd.f32 %v3445_v5, %v3356_v15  ;;  %v3538_v56 = vadd.f32 %v3926_v23, %v3360_v1  ;;  %v3532_v61 = vpop.f32.mrb[33].mxu1 }
 0x5eb   :  { %3551 = vst [vmem:[#allocation10] sm:$0xff] %v3444_v54  ;;  %v3533_v7 = vadd.f32 %v3532_v61, %v3360_v1 }
 0x5ec   :  { %3552 = vst [vmem:[#allocation10 + $0x8] sm:$0xff] %v3446_v21  ;;  %3556 = vst [vmem:[#allocation10 + $0x28] sm:$0xff] %v3538_v56  ;;  %v3449_v43 = vpop.f32.mrb[30].mxu0 }
 0x5ed   :  { %3553 = vst [vmem:[#allocation10 + $0x10] sm:$0xff] %v3533_v7  ;;  %v3450_v59 = vadd.f32 %v3449_v43, %v3352_v50  ;;  %v3451_v12 = vpop.f32.mrb[31].mxu0 }
 0x5ee   :  { %v3452_v28 = vadd.f32 %v3451_v12, %v3356_v15 }
 0x5ef   :  { %3554 = vst [vmem:[#allocation10 + $0x18] sm:$0xff] %v3450_v59 }
 0x5f0   :  { %3555 = vst [vmem:[#allocation10 + $0x20] sm:$0xff] %v3452_v28  ;;  %v3455_v27 = vpop.f32.mrb[32].mxu0 }
 0x5f1   :  { %v3456_v31 = vadd.f32 %v3455_v27, %v3352_v50  ;;  %v3457_v33 = vpop.f32.mrb[33].mxu0 }
 0x5f2   :  { %v3458_v34 = vadd.f32 %v3457_v33, %v3356_v15 }
 0x5f3   :  { %3557 = vst [vmem:[#allocation10 + $0x30] sm:$0xff] %v3456_v31 }
 0x5f4   :  { %3558 = vst [vmem:[#allocation10 + $0x38] sm:$0xff] %v3458_v34  ;;  %v3461_v6 = vpop.f32.mrb[34].mxu0  ;;  %v3929_v51 = vpop.f32.mrb[34].mxu1 }
 0x5f5   :  { %v3462_v22 = vadd.f32 %v3461_v6, %v3352_v50  ;;  %v3548_v14 = vadd.f32 %v3929_v51, %v3360_v1  ;;  %v3463_v58 = vpop.f32.mrb[35].mxu0  ;;  %v3542_v2 = vpop.f32.mrb[35].mxu1 }
 0x5f6   :  { %v3464_v20 = vadd.f32 %v3463_v58, %v3356_v15  ;;  %v3543_v42 = vadd.f32 %v3542_v2, %v3360_v1 }
 0x5f7   :  { %3560 = vst [vmem:[#allocation10 + $0x48] sm:$0xff] %v3462_v22  ;;  %3562 = vst [vmem:[#allocation10 + $0x58] sm:$0xff] %v3548_v14 }
 0x5f8   :  { %3561 = vst [vmem:[#allocation10 + $0x50] sm:$0xff] %v3464_v20  ;;  %3559 = vst [vmem:[#allocation10 + $0x40] sm:$0xff] %v3543_v42 }
 0x5f9   :  { %4277 = shalt.err (!%p4274_p0)
}
 0x5fa   :  { %s4278_s21 = scalar_lea.hbm %s5234_s5, 1536 }
 0x5fb   :  { %p4279_p1 = scmp.ne.s32.totalorder %s5234_s5, %s4278_s21  ;;  %p4282_p2 = scmp.lt.u32.totalorder %s4278_s21, %s5234_s5 }
 0x5fd   :  { %p4284_p3 = pnand %p4282_p2, %p4279_p1 }
 0x5ff   :  { %4287 = shalt.err (!%p4284_p3)
}
 0x600   :  { %3574 = dma.vmem_to_hbm [thread:$0]  %s3569_s16, 1536, %s5234_s5, [#allocation6], %s4298_s1, %s4298_s1, %s4299_s17  }
 0x601   :  { %4292 = dma.done.wait [#allocation6], 1536  }
 0x602   :  { %4293 = vsyncadd [#allocation6], 4294965760 }
 0x603   :  { %3578 = vsyncpa [#allocation5], 1 }
 0x604   :  { %3579 = vsyncpa [#allocation8], 1 }
 0x605   :  { %3580 = vsyncpa [#allocation6], 1 }

</bundles_post_ra>
